<compile_context>
chip_gen: v7x
topology: tpu7x:2x2x1
jax: 0.10.0
libtpu: 0.0.40
codegen_flags: <defaults>
</compile_context>

<pallas_src>
import functools

import jax
import jax.numpy as jnp
from jax import lax
from jax.experimental import pallas as pl
from jax.experimental.pallas import tpu as pltpu


def _sagan_attention_kernel(xq_ref, xk_ref, vk_ref, mqk_ref, rk_ref, gamma_ref,
                            o_ref,
                            st_ref, m_ref, l_ref, acc_ref,
                            *, c, tk, n_valid, apply_mask):
    """One grid step: (batch b, query tile qi, key/value tile ki).

    xq_ref : (1, C, tq)    query-rows slab of x (also the residual input)
    xk_ref : (1, C, tk)    key-cols slab of x
    vk_ref : (1, C+1, tk)  precomputed V slab, augmented with a ones row
    mqk_ref: (C, C)        M = Wq^T @ Wk
    rk_ref : (C, 1)        r = Wk^T @ bq
    gamma  : (1, 1)        SMEM scalar
    o_ref  : (1, C, tq)    output slab
    scratch: st (C,tq) bf16, m (1,tq) f32, l (1,tq) f32, acc (C,tq) f32
             (all persist across the ki axis)
    """
    ki = pl.program_id(2)
    nk = pl.num_programs(2)

    @pl.when(ki == 0)
    def _init():
        xi = xq_ref[0]                                                # (C, tq) f32
        # st[c, i] = (M^T x_i)[c] + r[c]; makes the energy tile below a single
        # MXU matmul with contraction depth C.
        st = lax.dot_general(
            mqk_ref[...], xi, (((0,), (0,)), ((), ())),
            preferred_element_type=jnp.float32) + rk_ref[...]
        st_ref[...] = st.astype(st_ref.dtype)                         # bf16
        m_ref[...] = jnp.full_like(m_ref, -jnp.inf)
        l_ref[...] = jnp.zeros_like(l_ref)
        acc_ref[...] = jnp.zeros_like(acc_ref)

    # Transposed energy tile: et[j, i] = q_i . k_j (i-constant bias terms
    # dropped -- exact under softmax over j).  bf16 operands, f32 accumulate.
    xj = xk_ref[0].astype(jnp.bfloat16)                               # (C, tk)
    et = lax.dot_general(xj, st_ref[...], (((0,), (0,)), ((), ())),
                         preferred_element_type=jnp.float32)          # (tk, tq)

    if apply_mask:
        # Padded key columns (global index >= n_valid) contribute nothing.
        key_idx = ki * tk + lax.broadcasted_iota(jnp.int32, (tk, 1), 0)
        et = jnp.where(key_idx < n_valid, et, -jnp.inf)

    # Online softmax over j (axis 0), keeping N as the lane dimension.
    m_new = jnp.maximum(m_ref[...], jnp.max(et, axis=0, keepdims=True))  # (1, tq)
    alpha = jnp.exp(m_ref[...] - m_new)                                  # (1, tq)
    # exp in f32 (v5e-safe: no bf16 EUP); cast result to bf16 for the MXU.
    # TODO(synk): on v6e/v7x the exp itself could run in bf16 for ~2x EUP rate.
    p = jnp.exp(et - m_new).astype(jnp.bfloat16)                         # (tk, tq)

    # One MXU matmul produces both the accumulator update (first C rows) and
    # the softmax denominator increment (last, ones-generated row).
    vj = vk_ref[0].astype(jnp.bfloat16)                                  # (C+1, tk)
    pv = jnp.dot(vj, p, preferred_element_type=jnp.float32)              # (C+1, tq)

    l_ref[...] = alpha * l_ref[...] + pv[c:, :]
    acc_ref[...] = alpha * acc_ref[...] + pv[:c, :]
    m_ref[...] = m_new

    @pl.when(ki == nk - 1)
    def _finalize():
        out = acc_ref[...] / l_ref[...]          # exact divide (tiny, once per tile)
        gamma = gamma_ref[0, 0]
        o_ref[0] = (gamma * out + xq_ref[0]).astype(o_ref.dtype)


def _pick_tile(n):
    for t in (1024, 512, 256, 128):
        if n % t == 0:
            return t
    raise ValueError("n must be a multiple of 128 (wrapper pads it)")


def self_attention_pallas(x, wq, bq, wk, bk, wv, bv, gamma):
    """x: (B, C, W, H) NCHW.  wq/wk: (C//8, C), wv: (C, C) (1x1 conv weights squeezed)."""
    B, C, W, H = x.shape
    N = W * H
    hp = lax.Precision.HIGHEST

    # NCHW-native: just flatten spatial -- no transposes in or out.
    x_cn = x.reshape(B, C, N).astype(jnp.float32)

    # Fold query/key projections (exact under softmax over the key axis).
    mqk = jnp.dot(wq.T, wk, precision=hp).astype(jnp.float32)            # (C, C)
    rk = jnp.dot(wk.T, bq, precision=hp).reshape(C, 1).astype(jnp.float32)

    # Hoisted value projection (one large XLA matmul), plus a ones row so the
    # kernel folds the softmax row-sum into the P@V matmul.
    v = (jnp.einsum('oc,bcn->bon', wv.astype(jnp.float32), x_cn, precision=hp)
         + bv.astype(jnp.float32)[None, :, None])                        # (B, C, N)

    # Pad N to a multiple of 128 so tiles always divide (never a full-axis
    # fallback / (N, N) materialization); padded key columns get masked.
    n_pad = ((N + 127) // 128) * 128
    if n_pad != N:
        pad = ((0, 0), (0, 0), (0, n_pad - N))
        x_cn_p = jnp.pad(x_cn, pad)
        v = jnp.pad(v, pad)
    else:
        x_cn_p = x_cn
    v_aug = jnp.concatenate(
        [v, jnp.ones((B, 1, n_pad), jnp.float32)], axis=1)               # (B, C+1, n_pad)

    gamma2 = gamma.reshape(1, 1).astype(jnp.float32)                     # SMEM scalar

    tq = _pick_tile(n_pad)
    tk = _pick_tile(n_pad)
    nq, nk = n_pad // tq, n_pad // tk

    kernel = functools.partial(
        _sagan_attention_kernel, c=C, tk=tk, n_valid=N, apply_mask=(n_pad != N))

    out_cn = pl.pallas_call(
        kernel,
        out_shape=jax.ShapeDtypeStruct((B, C, n_pad), x.dtype),
        grid=(B, nq, nk),
        in_specs=[
            pl.BlockSpec((1, C, tq), lambda b, qi, ki: (b, 0, qi)),      # x (query rows)
            pl.BlockSpec((1, C, tk), lambda b, qi, ki: (b, 0, ki)),      # x (key cols)
            pl.BlockSpec((1, C + 1, tk), lambda b, qi, ki: (b, 0, ki)),  # V (+ ones row)
            pl.BlockSpec((C, C), lambda b, qi, ki: (0, 0)),              # M = Wq^T Wk
            pl.BlockSpec((C, 1), lambda b, qi, ki: (0, 0)),              # r = Wk^T bq
            pl.BlockSpec(memory_space=pltpu.MemorySpace.SMEM),           # gamma scalar
        ],
        out_specs=pl.BlockSpec((1, C, tq), lambda b, qi, ki: (b, 0, qi)),
        scratch_shapes=[
            pltpu.VMEM((C, tq), jnp.bfloat16),   # st = M^T x_i + r (bf16 MXU operand)
            pltpu.VMEM((1, tq), jnp.float32),    # running max
            pltpu.VMEM((1, tq), jnp.float32),    # running sum
            pltpu.VMEM((C, tq), jnp.float32),    # output accumulator
        ],
        compiler_params=pltpu.CompilerParams(
            dimension_semantics=("parallel", "parallel", "arbitrary"),
            vmem_limit_bytes=64 * 1024 * 1024),
    )(x_cn_p, x_cn_p, v_aug, mqk, rk, gamma2)

    if n_pad != N:
        out_cn = out_cn[:, :, :N]
    return out_cn.reshape(B, C, W, H)


def self_attention_ref(x, wq, bq, wk, bk, wv, bv, gamma):
    """Pure-JAX reference mirroring the PyTorch forward exactly (no folding)."""
    B, C, W, H = x.shape
    N = W * H
    hp = lax.Precision.HIGHEST
    xf = x.reshape(B, C, N)
    q = jnp.einsum('oc,bcn->bon', wq, xf, precision=hp) + bq[None, :, None]
    k = jnp.einsum('oc,bcn->bon', wk, xf, precision=hp) + bk[None, :, None]
    v = jnp.einsum('oc,bcn->bon', wv, xf, precision=hp) + bv[None, :, None]
    energy = jnp.einsum('bci,bcj->bij', q, k, precision=hp)              # (B, N, N)
    attn = jax.nn.softmax(energy, axis=-1)
    out = jnp.einsum('bcj,bij->bci', v, attn, precision=hp)              # (B, C, N)
    out = out.reshape(B, C, W, H)
    return gamma[0] * out + x


if __name__ == "__main__":
    key = jax.random.PRNGKey(0)
    B, C, W, H = 2, 32, 16, 16
    C8 = C // 8
    ks = jax.random.split(key, 7)

    x  = jax.random.normal(ks[0], (B, C, W, H), jnp.float32)
    wq = jax.random.normal(ks[1], (C8, C), jnp.float32) * 0.1
    bq = jax.random.normal(ks[2], (C8,), jnp.float32) * 0.1
    wk = jax.random.normal(ks[3], (C8, C), jnp.float32) * 0.1
    bk = jax.random.normal(ks[4], (C8,), jnp.float32) * 0.1
    wv = jax.random.normal(ks[5], (C, C), jnp.float32) * 0.1
    bv = jax.random.normal(ks[6], (C,), jnp.float32) * 0.1
    # PyTorch __init__ sets gamma = 0 (output == input); use a nonzero
    # deterministic value so the attention path actually contributes here.
    gamma = jnp.array([0.5], jnp.float32)

    out = self_attention_pallas(x, wq, bq, wk, bk, wv, bv, gamma)
    out = jax.block_until_ready(out)

    ref = self_attention_ref(x, wq, bq, wk, bk, wv, bv, gamma)
    assert out.shape == x.shape
    # bf16 MXU operands + bf16 p introduce ~1e-3-level error vs the f32
    # HIGHEST-precision reference; 1e-2 tolerance leaves ample margin.
    assert jnp.allclose(out, ref, rtol=1e-2, atol=1e-2), \
        f"max abs err = {float(jnp.max(jnp.abs(out - ref)))}"
    print("KERNEL_OK")
</pallas_src>

<mosaic_0001>
module attributes {stable_mosaic.version = 11 : i64} {
  func.func @_sagan_attention_kernel(%arg0: i32, %arg1: i32, %arg2: i32, %arg3: memref<1x32x256xf32, #tpu.memory_space<vmem>>, %arg4: memref<1x32x256xf32, #tpu.memory_space<vmem>>, %arg5: memref<1x33x256xf32, #tpu.memory_space<vmem>>, %arg6: memref<32x32xf32, #tpu.memory_space<vmem>>, %arg7: memref<32x1xf32, #tpu.memory_space<vmem>>, %arg8: memref<1x1xf32, #tpu.memory_space<smem>>, %arg9: memref<1x32x256xf32, #tpu.memory_space<vmem>>, %arg10: memref<32x256xbf16, #tpu.memory_space<vmem>>, %arg11: memref<1x256xf32, #tpu.memory_space<vmem>>, %arg12: memref<1x256xf32, #tpu.memory_space<vmem>>, %arg13: memref<32x256xf32, #tpu.memory_space<vmem>>) attributes {dimension_semantics = [#tpu.dimension_semantics<parallel>, #tpu.dimension_semantics<parallel>, #tpu.dimension_semantics<arbitrary>], iteration_bounds = array<i64: 2, 1, 1>, scalar_prefetch = 0 : i64, scratch_operands = 4 : i64, tpu.core_type = #tpu.core_type<tc>, window_params = [{transform_indices = @transform_0, window_bounds = array<i64: 1, 32, 256>}, {transform_indices = @transform_1, window_bounds = array<i64: 1, 32, 256>}, {transform_indices = @transform_2, window_bounds = array<i64: 1, 33, 256>}, {pipeline_mode = #tpu.pipeline_mode<synchronous>, transform_indices = @transform_3, window_bounds = array<i64: 32, 32>}, {pipeline_mode = #tpu.pipeline_mode<synchronous>, transform_indices = @transform_4, window_bounds = array<i64: 32, 1>}, {transform_indices = @transform_5, window_bounds = array<i64: 1, 1>}, {transform_indices = @transform_6, window_bounds = array<i64: 1, 32, 256>}]} {
    %c0_i32 = arith.constant 0 : i32
    %0 = arith.cmpi eq, %arg2, %c0_i32 : i32
    %1 = arith.extui %0 : i1 to i32
    %c0_i32_0 = arith.constant 0 : i32
    %2 = arith.cmpi ne, %1, %c0_i32_0 : i32
    scf.if %2 {
      %c0_26 = arith.constant 0 : index
      %c0_27 = arith.constant 0 : index
      %c0_28 = arith.constant 0 : index
      %38 = vector.load %arg3[%c0_26, %c0_27, %c0_28] : memref<1x32x256xf32, #tpu.memory_space<vmem>>, vector<1x32x256xf32>
      %39 = vector.shape_cast %38 : vector<1x32x256xf32> to vector<32x256xf32>
      %c0_29 = arith.constant 0 : index
      %c0_30 = arith.constant 0 : index
      %40 = vector.load %arg6[%c0_29, %c0_30] : memref<32x32xf32, #tpu.memory_space<vmem>>, vector<32x32xf32>
      %cst_31 = arith.constant dense<0.000000e+00> : vector<32x256xf32>
      %41 = tpu.matmul %40, %39, %cst_31 {dimension_numbers = #tpu.dot_dimension_numbers<[0], [0], [1], [1], [0, 1, 1, 1], [], []>} : vector<32x32xf32>, vector<32x256xf32>, vector<32x256xf32> -> vector<32x256xf32>
      %c0_32 = arith.constant 0 : index
      %c0_33 = arith.constant 0 : index
      %42 = vector.load %arg7[%c0_32, %c0_33] : memref<32x1xf32, #tpu.memory_space<vmem>>, vector<32x1xf32>
      %43 = vector.broadcast %42 : vector<32x1xf32> to vector<32x256xf32>
      %44 = arith.addf %41, %43 : vector<32x256xf32>
      %45 = arith.truncf %44 : vector<32x256xf32> to vector<32x256xbf16>
      %c0_34 = arith.constant 0 : index
      %c0_35 = arith.constant 0 : index
      %46 = vector.load %arg10[%c0_34, %c0_35] : memref<32x256xbf16, #tpu.memory_space<vmem>>, vector<32x256xbf16>
      tpu.vector_store %arg10[%c0_34, %c0_35], %45 {strides = array<i32>} : memref<32x256xbf16, #tpu.memory_space<vmem>>, vector<32x256xbf16>,
      %cst_36 = arith.constant 0xFF800000 : f32
      %47 = vector.broadcast %cst_36 : f32 to vector<1x256xf32>
      %c0_37 = arith.constant 0 : index
      %c0_38 = arith.constant 0 : index
      %48 = vector.load %arg11[%c0_37, %c0_38] : memref<1x256xf32, #tpu.memory_space<vmem>>, vector<1x256xf32>
      tpu.vector_store %arg11[%c0_37, %c0_38], %47 {strides = array<i32>} : memref<1x256xf32, #tpu.memory_space<vmem>>, vector<1x256xf32>,
      %cst_39 = arith.constant 0.000000e+00 : f32
      %49 = vector.broadcast %cst_39 : f32 to vector<1x256xf32>
      %c0_40 = arith.constant 0 : index
      %c0_41 = arith.constant 0 : index
      %50 = vector.load %arg12[%c0_40, %c0_41] : memref<1x256xf32, #tpu.memory_space<vmem>>, vector<1x256xf32>
      tpu.vector_store %arg12[%c0_40, %c0_41], %49 {strides = array<i32>} : memref<1x256xf32, #tpu.memory_space<vmem>>, vector<1x256xf32>,
      %cst_42 = arith.constant 0.000000e+00 : f32
      %51 = vector.broadcast %cst_42 : f32 to vector<32x256xf32>
      %c0_43 = arith.constant 0 : index
      %c0_44 = arith.constant 0 : index
      %52 = vector.load %arg13[%c0_43, %c0_44] : memref<32x256xf32, #tpu.memory_space<vmem>>, vector<32x256xf32>
      tpu.vector_store %arg13[%c0_43, %c0_44], %51 {strides = array<i32>} : memref<32x256xf32, #tpu.memory_space<vmem>>, vector<32x256xf32>,
    } else {
    }
    %c0 = arith.constant 0 : index
    %c0_1 = arith.constant 0 : index
    %c0_2 = arith.constant 0 : index
    %3 = vector.load %arg4[%c0, %c0_1, %c0_2] : memref<1x32x256xf32, #tpu.memory_space<vmem>>, vector<1x32x256xf32>
    %4 = vector.shape_cast %3 : vector<1x32x256xf32> to vector<32x256xf32>
    %5 = arith.truncf %4 : vector<32x256xf32> to vector<32x256xbf16>
    %c0_3 = arith.constant 0 : index
    %c0_4 = arith.constant 0 : index
    %6 = vector.load %arg10[%c0_3, %c0_4] : memref<32x256xbf16, #tpu.memory_space<vmem>>, vector<32x256xbf16>
    %cst = arith.constant dense<0.000000e+00> : vector<256x256xf32>
    %7 = tpu.matmul %5, %6, %cst {dimension_numbers = #tpu.dot_dimension_numbers<[0], [0], [1], [1], [0, 1, 1, 1], [], []>} : vector<32x256xbf16>, vector<32x256xbf16>, vector<256x256xf32> -> vector<256x256xf32>
    %c0_5 = arith.constant 0 : index
    %c0_6 = arith.constant 0 : index
    %8 = vector.load %arg11[%c0_5, %c0_6] : memref<1x256xf32, #tpu.memory_space<vmem>>, vector<1x256xf32>
    %cst_7 = arith.constant dense<0xFF800000> : vector<256xf32>
    %9 = vector.multi_reduction <maximumf>, %7, %cst_7 [0] : vector<256x256xf32> to vector<256xf32>
    %10 = vector.shape_cast %9 : vector<256xf32> to vector<1x256xf32>
    %11 = arith.maximumf %8, %10 : vector<1x256xf32>
    %c0_8 = arith.constant 0 : index
    %c0_9 = arith.constant 0 : index
    %12 = vector.load %arg11[%c0_8, %c0_9] : memref<1x256xf32, #tpu.memory_space<vmem>>, vector<1x256xf32>
    %13 = arith.subf %12, %11 : vector<1x256xf32>
    %14 = math.exp %13 : vector<1x256xf32>
    %15 = vector.broadcast %11 : vector<1x256xf32> to vector<256x256xf32>
    %16 = arith.subf %7, %15 : vector<256x256xf32>
    %17 = math.exp %16 : vector<256x256xf32>
    %18 = arith.truncf %17 : vector<256x256xf32> to vector<256x256xbf16>
    %c0_10 = arith.constant 0 : index
    %c0_11 = arith.constant 0 : index
    %c0_12 = arith.constant 0 : index
    %19 = vector.load %arg5[%c0_10, %c0_11, %c0_12] : memref<1x33x256xf32, #tpu.memory_space<vmem>>, vector<1x33x256xf32>
    %20 = vector.shape_cast %19 : vector<1x33x256xf32> to vector<33x256xf32>
    %21 = arith.truncf %20 : vector<33x256xf32> to vector<33x256xbf16>
    %cst_13 = arith.constant dense<0.000000e+00> : vector<33x256xf32>
    %22 = tpu.matmul %21, %18, %cst_13 {dimension_numbers = #tpu.dot_dimension_numbers<[1], [0], [0], [1], [0, 0, 1, 1], [], []>} : vector<33x256xbf16>, vector<256x256xbf16>, vector<33x256xf32> -> vector<33x256xf32>
    %c0_14 = arith.constant 0 : index
    %c0_15 = arith.constant 0 : index
    %23 = vector.load %arg12[%c0_14, %c0_15] : memref<1x256xf32, #tpu.memory_space<vmem>>, vector<1x256xf32>
    %24 = arith.mulf %14, %23 : vector<1x256xf32>
    %25 = vector.extract_strided_slice %22 {offsets = [32, 0], sizes = [1, 256], strides = [1, 1]} : vector<33x256xf32> to vector<1x256xf32>
    %26 = arith.addf %24, %25 : vector<1x256xf32>
    %c0_16 = arith.constant 0 : index
    %c0_17 = arith.constant 0 : index
    %27 = vector.load %arg12[%c0_16, %c0_17] : memref<1x256xf32, #tpu.memory_space<vmem>>, vector<1x256xf32>
    tpu.vector_store %arg12[%c0_16, %c0_17], %26 {strides = array<i32>} : memref<1x256xf32, #tpu.memory_space<vmem>>, vector<1x256xf32>,
    %c0_18 = arith.constant 0 : index
    %c0_19 = arith.constant 0 : index
    %28 = vector.load %arg13[%c0_18, %c0_19] : memref<32x256xf32, #tpu.memory_space<vmem>>, vector<32x256xf32>
    %29 = vector.broadcast %14 : vector<1x256xf32> to vector<32x256xf32>
    %30 = arith.mulf %29, %28 : vector<32x256xf32>
    %31 = vector.extract_strided_slice %22 {offsets = [0, 0], sizes = [32, 256], strides = [1, 1]} : vector<33x256xf32> to vector<32x256xf32>
    %32 = arith.addf %30, %31 : vector<32x256xf32>
    %c0_20 = arith.constant 0 : index
    %c0_21 = arith.constant 0 : index
    %33 = vector.load %arg13[%c0_20, %c0_21] : memref<32x256xf32, #tpu.memory_space<vmem>>, vector<32x256xf32>
    tpu.vector_store %arg13[%c0_20, %c0_21], %32 {strides = array<i32>} : memref<32x256xf32, #tpu.memory_space<vmem>>, vector<32x256xf32>,
    %c0_22 = arith.constant 0 : index
    %c0_23 = arith.constant 0 : index
    %34 = vector.load %arg11[%c0_22, %c0_23] : memref<1x256xf32, #tpu.memory_space<vmem>>, vector<1x256xf32>
    tpu.vector_store %arg11[%c0_22, %c0_23], %11 {strides = array<i32>} : memref<1x256xf32, #tpu.memory_space<vmem>>, vector<1x256xf32>,
    %c0_i32_24 = arith.constant 0 : i32
    %35 = arith.cmpi eq, %arg2, %c0_i32_24 : i32
    %36 = arith.extui %35 : i1 to i32
    %c0_i32_25 = arith.constant 0 : i32
    %37 = arith.cmpi ne, %36, %c0_i32_25 : i32
    scf.if %37 {
      %c0_26 = arith.constant 0 : index
      %c0_27 = arith.constant 0 : index
      %38 = vector.load %arg13[%c0_26, %c0_27] : memref<32x256xf32, #tpu.memory_space<vmem>>, vector<32x256xf32>
      %c0_28 = arith.constant 0 : index
      %c0_29 = arith.constant 0 : index
      %39 = vector.load %arg12[%c0_28, %c0_29] : memref<1x256xf32, #tpu.memory_space<vmem>>, vector<1x256xf32>
      %40 = vector.broadcast %39 : vector<1x256xf32> to vector<32x256xf32>
      %41 = arith.divf %38, %40 : vector<32x256xf32>
      %c0_30 = arith.constant 0 : index
      %c0_31 = arith.constant 0 : index
      %42 = memref.load %arg8[%c0_30, %c0_31] : memref<1x1xf32, #tpu.memory_space<smem>>
      %43 = vector.broadcast %42 : f32 to vector<32x256xf32>
      %44 = arith.mulf %43, %41 : vector<32x256xf32>
      %c0_32 = arith.constant 0 : index
      %c0_33 = arith.constant 0 : index
      %c0_34 = arith.constant 0 : index
      %45 = vector.load %arg3[%c0_32, %c0_33, %c0_34] : memref<1x32x256xf32, #tpu.memory_space<vmem>>, vector<1x32x256xf32>
      %46 = vector.shape_cast %45 : vector<1x32x256xf32> to vector<32x256xf32>
      %47 = arith.addf %44, %46 : vector<32x256xf32>
      %c0_35 = arith.constant 0 : index
      %c0_36 = arith.constant 0 : index
      %c0_37 = arith.constant 0 : index
      %48 = vector.load %arg9[%c0_35, %c0_36, %c0_37] : memref<1x32x256xf32, #tpu.memory_space<vmem>>, vector<1x32x256xf32>
      %49 = vector.shape_cast %48 : vector<1x32x256xf32> to vector<32x256xf32>
      %50 = vector.shape_cast %47 : vector<32x256xf32> to vector<1x32x256xf32>
      tpu.vector_store %arg9[%c0_35, %c0_36, %c0_37], %50 {strides = array<i32>} : memref<1x32x256xf32, #tpu.memory_space<vmem>>, vector<1x32x256xf32>,
    } else {
    }
    return
  }
  func.func @transform_0(%arg0: i32, %arg1: i32, %arg2: i32) -> (i32, i32, i32) {
    %c0_i32 = arith.constant 0 : i32
    %c0_i32_0 = arith.constant 0 : i32
    return %arg0, %c0_i32, %arg1 : i32, i32, i32
  }
  func.func @transform_1(%arg0: i32, %arg1: i32, %arg2: i32) -> (i32, i32, i32) {
    %c0_i32 = arith.constant 0 : i32
    %c0_i32_0 = arith.constant 0 : i32
    return %arg0, %c0_i32, %arg2 : i32, i32, i32
  }
  func.func @transform_2(%arg0: i32, %arg1: i32, %arg2: i32) -> (i32, i32, i32) {
    %c0_i32 = arith.constant 0 : i32
    %c0_i32_0 = arith.constant 0 : i32
    return %arg0, %c0_i32, %arg2 : i32, i32, i32
  }
  func.func @transform_3(%arg0: i32, %arg1: i32, %arg2: i32) -> (i32, i32) {
    %c0_i32 = arith.constant 0 : i32
    %c0_i32_0 = arith.constant 0 : i32
    %c0_i32_1 = arith.constant 0 : i32
    return %c0_i32, %c0_i32_0 : i32, i32
  }
  func.func @transform_4(%arg0: i32, %arg1: i32, %arg2: i32) -> (i32, i32) {
    %c0_i32 = arith.constant 0 : i32
    %c0_i32_0 = arith.constant 0 : i32
    %c0_i32_1 = arith.constant 0 : i32
    return %c0_i32, %c0_i32_0 : i32, i32
  }
  func.func @transform_5(%arg0: i32, %arg1: i32, %arg2: i32) -> (i32, i32) {
    %c0_i32 = arith.constant 0 : i32
    %c0_i32_0 = arith.constant 0 : i32
    %c0_i32_1 = arith.constant 0 : i32
    return %c0_i32, %c0_i32_0 : i32, i32
  }
  func.func @transform_6(%arg0: i32, %arg1: i32, %arg2: i32) -> (i32, i32, i32) {
    %c0_i32 = arith.constant 0 : i32
    %c0_i32_0 = arith.constant 0 : i32
    return %arg0, %c0_i32, %arg1 : i32, i32, i32
  }
}

</mosaic_0001>

<bundles_post_ra>
// kernel: tpu_custom_call.1
= control target key start
LH: loop header
LB: loop body
LE: loop exit
PB: predicated region body
PF: predicated region fallthrough
CT: control target
= control target key end

     0   :  { %s3213_s0 = inlined_call_operand.hbm [shape: f32[2,32,256], index: 0, kind: input, shape index: {}]   ;;  %s3214_s1 = inlined_call_operand.hbm [shape: f32[2,32,256], index: 1, kind: input, shape index: {}]   ;;  %s3215_s2 = inlined_call_operand.hbm [shape: f32[2,33,256], index: 2, kind: input, shape index: {}]   ;;  %s3216_s3 = inlined_call_operand.hbm [shape: f32[32,32], index: 3, kind: input, shape index: {}]   ;;  %s3217_s4 = inlined_call_operand.hbm [shape: f32[32,1], index: 4, kind: input, shape index: {}]   ;;  %s3218_s5 = inlined_call_operand.<no memory space> [shape: f32[1,1], index: 5, kind: input, shape index: {}]   ;;  %s3219_s6 = inlined_call_operand.hbm [shape: f32[2,32,256], index: 6, kind: output, shape index: {}]  }
   0x1   :  { %3304 = sst [smem:[#allocation57_spill]] %s3214_s1 }
   0x2   :  { %3305 = sst [smem:[#allocation58_spill]] %s3216_s3 }
   0x3   :  { %11 = sst [smem:[#allocation6]] %s3218_s5 }
   0x4   :  { %12 = vsyncpa [#allocation8], 0 }
   0x5   :  { %14 = vsyncpa [#allocation8 + $0x1], 0 }
   0x6   :  { %15 = vsyncpa [#allocation11], 0 }
   0x7   :  { %17 = vsyncpa [#allocation11 + $0x1], 0 }
   0x8   :  { %18 = vsyncpa [#allocation14], 0 }
   0x9   :  { %19 = vsyncpa [#allocation9], 0 }
   0xa   :  { %21 = vsyncpa [#allocation9 + $0x1], 0  ;;  %s2210_s23 = smov 0   ;;  %s2212_s24 = smov 0  }
   0xb   :  { %s2214_s25 = smov 0   ;;  %s2216_s26 = smov 0  }
   0xc   :  { %s2218_s27 = smov 0   ;;  %s2220_s28 = smov 0  }
   0xd LB: > { %3306 = sst [smem:[#allocation21_spill]] %s2134_s23  ;;  %s2241_s5 = sadd.s32 4294967295, %s2154_s28   ;;  %s2154_s28 = sphi %s2220_s28, %s27_s28   ;;  %s2150_s27 = sphi %s2218_s27, %s3492_s27   ;;  %s2146_s26 = sphi %s2216_s26, %s3491_s26   ;;  %s2142_s25 = sphi %s2214_s25, %s3490_s25   ;;  %s2138_s24 = sphi %s2212_s24, %s3489_s24   ;;  %s2134_s23 = sphi %s2210_s23, %s3488_s23  }
   0xe   : > { %s1622_s29 = sadd.s32 4294967294, %s2154_s28   ;;  %p62_p0 = scmp.ne.s32.totalorder %s2142_s25, %s2138_s24 }
   0xf   : > { %p63_p1 = scmp.eq.s32.totalorder %s2154_s28, 0  ;;  %p68_p2 = scmp.ne.s32.totalorder %s2138_s24, %s2134_s23 }
  0x10   : > { %p3220_p3 = scmp.eq.s32.totalorder %s2241_s5, 0  ;;  %p213_p4 = scmp.eq.s32.totalorder %s2241_s5, 1 }
  0x11   : > { %p2252_p5 = por %p63_p1, %p62_p0  ;;  %p219_p6 = scmp.eq.s32.totalorder %s1622_s29, 1 }
  0x12   : > { %p2258_p7 = por %p3220_p3, %p68_p2  ;;  %p2262_p8 = por %p213_p4, %p62_p0 }
  0x13   : > { %p2266_p9 = por %p219_p6, %p68_p2  ;;  %p1623_p10 = scmp.ge.s32.totalorder %s2154_s28, 1 }
  0x14   : > { %s3308_s8 = scalar_select %p2258_p7, 1, 0 }
  0x15   : > { %s3309_s9 = scalar_select %p2262_p8, 1, 0 }
  0x16   : > { %s3310_s10 = scalar_select %p2266_p9, 1, 0 }
  0x17   : > { %p226_p11 = scmp.lt.s32.totalorder %s2154_s28, 3  ;;  %s2156_s12 = smov [#allocation13]  }
  0x18   : > { %3311 = sst [smem:[#allocation22_spill]] %s3310_s10  ;;  %s238_s13 = sshll.u32 %s2156_s12, 4  ;;  %s2276_s13 = int_to_ptr.vmem [resolvable:$true] %s238_s13 }
  0x19   : > { %p2272_p12 = pnand %p1623_p10, %p226_p11  ;;  %s46_s15 = sadd.s32 1, %s2150_s27 }
  0x1a   : > { %s2290_s16 = sand.u32 1, %s2142_s25   ;;  %p2292_p4 = scmp.ge.s32.totalorder %s46_s15, 2 }
  0x1b   : > { %s3312_s11 = scalar_select %p2272_p12, 1, 0 }
  0x1c   : > { %p1695_p13 = pneg %p2272_p12  ;;  %s3315_s3 = sld [smem:[#allocation58_spill]] }
  0x1e   : > { %p2284_p2 = pnand %p1695_p13, %p3220_p3 }
  0x20   : > { %s3313_s14 = scalar_select %p2284_p2, 1, 0 }
  0x21   : > { %p3230_p10 = pneg %p2284_p2 }
  0x22   : > { %s1918_s20 = scalar_lea.hbm %s3315_s3, 512 }
  0x23   : > { %p1919_p6 = scmp.ne.s32.totalorder %s3315_s3, %s1918_s20  ;;  %p1925_p0 = scmp.lt.u32.totalorder %s1918_s20, %s3315_s3 }
  0x25   : > { %p1921_p11 = pnand %p3230_p10, %p1919_p6 }
  0x27   : > { %p1922_p13 = pneg %p1921_p11 }
  0x29   : > { %p1927_p3 = pnand %p1925_p0, %p1922_p13 }
  0x2b   : > { %1930 = shalt.err (!%p1927_p3)
}
  0x2c   : > { %s1931_s18 = scalar_lea.vmem %s2276_s13, 512  ;;  %p1939_p7 = scmp.lt.s32.totalorder %s2276_s13, %s2276_s13 }
  0x2d   : > { %p1932_p1 = scmp.ne.s32.totalorder %s2276_s13, %s1931_s18  ;;  %p1940_p6 = scmp.lt.s32.totalorder %s1931_s18, %s1931_s18 }
  0x2f   : > { %p1934_p9 = pnand %p1932_p1, %p3230_p10  ;;  %p1941_p11 = por %p1940_p6, %p1939_p7 }
  0x31   : > { %p1935_p8 = pneg %p1934_p9 }
  0x33   : > { %p1942_p12 = pnand %p1941_p11, %p1935_p8 }
  0x35   : > { %1945 = shalt.err (!%p1942_p12)
}
  0x36   : > { %s3226_s19 = smov 128   ;;  %s3227_s20 = smov 8  }
  0x37   : > { %1698 = dma.hbm_to_vmem [thread:$0]  (!%p2284_p2), %s3315_s3, 512, %s2276_s13, [#allocation14], %s3226_s19, %s3226_s19, %s3227_s20  }
  0x38   : > { %s3494_s15 = smov (%p2292_p4, %s46_s15), 0  ;;  %s3228_s29 = sshll.u32 %s2290_s16, 6 }
  0x39   : > { %3316 = sst [smem:[#allocation23_spill]] %s3494_s15  ;;  %s3229_s12 = sshll.u32 %s2150_s27, 10 }
  0x3a   : > { %s50_s18 = ssub.s32 %s2150_s27, %s3494_s15  ;;  %p3317_p3 = scmp.lt.s32.totalorder %s2154_s28, 2 }
  0x3b   : > { %p53_p8 = scmp.eq.s32.totalorder %s50_s18, 0  ;;  %s3319_s10 = sadd.s32 1, %s2142_s25 }
  0x3c   : > { %p2338_p7 = pnand %p3317_p3, %p2252_p5  ;;  %s291_s21 = sand.u32 1, %s2154_s28  }
  0x3d   : > { %s2345_s23 = scalar_select %p53_p8, %s2142_s25, %s3319_s10  }
  0x3e   : > { %s3318_s30 = scalar_select %p2338_p7, 1, 0 }
  0x3f   : > { %3320 = sst [smem:[#allocation24_spill]] %s2345_s23  ;;  %s3321_s1 = sld [smem:[#allocation57_spill]] }
  0x40   : > { %s295_s7 = scalar_lea.vmem [#allocation10], %s3228_s29  ;;  %s2159_s18 = smov [#allocation15]  }
  0x41   : > { %s304_s19 = sshll.u32 %s295_s7, 4  ;;  %s2359_s20 = sshll.u32 %s2159_s18, 4  ;;  %s2357_s19 = int_to_ptr.vmem [resolvable:$true] %s304_s19  ;;  %s252_s20 = int_to_ptr.vmem [resolvable:$true] %s2359_s20 }
  0x42   : > { %s2361_s10 = scalar_lea.sflag [#allocation11], %s291_s21  ;;  %p2367_p9 = pneg %p2338_p7 }
  0x44   : > { %s3322_s13 = scalar_select %p2367_p9, 1, 0 }
  0x45   : > { %s2353_s22 = scalar_lea.hbm %s3321_s1, %s3229_s12  ;;  %s1951_s29 = scalar_lea.hbm %s3321_s1, 2048 }
  0x46   : > { %s1946_s3 = scalar_lea.hbm %s2353_s22, 1024  ;;  %p1952_p1 = scmp.lt.u32.totalorder %s2353_s22, %s3321_s1 }
  0x47   : > { %p1947_p5 = scmp.ne.s32.totalorder %s2353_s22, %s1946_s3  ;;  %p1953_p4 = scmp.lt.u32.totalorder %s1951_s29, %s1946_s3 }
  0x48   : > { %p1955_p6 = scmp.lt.u32.totalorder %s1946_s3, %s2353_s22 }
  0x49   : > { %p1949_p12 = pnand %p2367_p9, %p1947_p5  ;;  %p1954_p13 = por %p1953_p4, %p1952_p1 }
  0x4b   : > { %p1950_p0 = pneg %p1949_p12  ;;  %p1956_p11 = por %p1955_p6, %p1954_p13 }
  0x4d   : > { %p1957_p3 = pnand %p1956_p11, %p1950_p0 }
  0x4f   : > { %1960 = shalt.err (!%p1957_p3)
}
  0x50   : > { %s1961_s21 = scalar_lea.vmem %s2357_s19, 1024  ;;  %s2160_s17 = smov [#allocation10]  }
  0x51   : > { %p1962_p8 = scmp.ne.s32.totalorder %s2357_s19, %s1961_s21  ;;  %s1966_s7 = sshll.u32 %s2160_s17, 4  ;;  %s1967_s7 = int_to_ptr.vmem [resolvable:$false] %s1966_s7 }
  0x52   : > { %s1968_s12 = scalar_lea.vmem %s1967_s7, 2048  ;;  %p1969_p10 = scmp.lt.s32.totalorder %s2357_s19, %s1967_s7 }
  0x53   : > { %p1964_p5 = pnand %p1962_p8, %p2367_p9  ;;  %p1970_p2 = scmp.lt.s32.totalorder %s1968_s12, %s1961_s21 }
  0x55   : > { %p1965_p12 = pneg %p1964_p5  ;;  %p1971_p1 = por %p1970_p2, %p1969_p10 }
  0x57   : > { %p1972_p4 = pnand %p1971_p1, %p1965_p12 }
  0x59   : > { %1975 = shalt.err (!%p1972_p4)
}
  0x5a   : > { %s3238_s3 = smov 256   ;;  %s3240_s29 = smov 16  }
  0x5b   : > { %1708 = dma.hbm_to_vmem [thread:$0]  (!%p2338_p7), %s2353_s22, 1024, %s2357_s19, %s2361_s10, %s3238_s3, %s3238_s3, %s3240_s29  }
  0x5c   : > { %s1976_s21 = scalar_lea.hbm %s3217_s4, 512  ;;  %p3323_p10 = scmp.ne.s32.totalorder %s3313_s14, 0 }
  0x5d   : > { %p1977_p2 = scmp.ne.s32.totalorder %s3217_s4, %s1976_s21  ;;  %p1983_p11 = scmp.lt.u32.totalorder %s1976_s21, %s3217_s4 }
  0x5e   : > { %p3324_p0 = pneg %p3323_p10 }
  0x60   : > { %p1979_p13 = pnand %p1977_p2, %p3324_p0 }
  0x62   : > { %p1980_p6 = pneg %p1979_p13 }
  0x64   : > { %p1985_p3 = pnand %p1983_p11, %p1980_p6 }
  0x66   : > { %1988 = shalt.err (!%p1985_p3)
}
  0x67   : > { %s1989_s19 = scalar_lea.vmem %s252_s20, 512  ;;  %p3325_p5 = pmov %p3324_p0 }
  0x68   : > { %p1990_p8 = scmp.ne.s32.totalorder %s252_s20, %s1989_s19  ;;  %p1997_p4 = scmp.lt.s32.totalorder %s252_s20, %s252_s20 }
  0x69   : > { %p1998_p7 = scmp.lt.s32.totalorder %s1989_s19, %s1989_s19 }
  0x6a   : > { %p1992_p12 = pnand %p1990_p8, %p3325_p5 }
  0x6b   : > { %p1999_p9 = por %p1998_p7, %p1997_p4 }
  0x6c   : > { %p1993_p1 = pneg %p1992_p12 }
  0x6e   : > { %p2000_p0 = pnand %p1999_p9, %p1993_p1 }
  0x70   : > { %2003 = shalt.err (!%p2000_p0)
}
  0x71   : > { %s3326_s22 = smov 8   ;;  %s3327_s18 = smov 128  }
  0x72   : > { %1701 = dma.hbm_to_vmem [thread:$0]  (!%p3323_p10), %s3217_s4, 512, %s252_s20, [#allocation14], %s3327_s18, %s3327_s18, %s3326_s22  }
  0x73   : > { %s3328_s17 = sshll.u32 %s2150_s27, 10  ;;  %s3329_s14 = sshll.u32 %s2290_s16, 6 }
  0x74   : > { %s2423_s12 = scalar_lea.hbm %s3213_s0, %s3328_s17  ;;  %s272_s19 = scalar_lea.vmem [#allocation7], %s3329_s14 }
  0x75   : > { %s281_s1 = sshll.u32 %s272_s19, 4  ;;  %s1676_s15 = smul.u32 80, %s2290_s16  ;;  %s2428_s1 = int_to_ptr.vmem [resolvable:$true] %s281_s1 }
  0x76   : > { %s1677_s3 = smul.u32 1280, %s2150_s27  ;;  %s269_s29 = scalar_lea.sflag [#allocation8], %s2290_s16 }
  0x77   : > { %s2004_s23 = scalar_lea.hbm %s2423_s12, 1024  ;;  %p3330_p9 = scmp.ne.s32.totalorder %s3322_s13, 0 }
  0x78   : > { %p2005_p7 = scmp.ne.s32.totalorder %s2423_s12, %s2004_s23  ;;  %s2009_s18 = scalar_lea.hbm %s3213_s0, 2048 }
  0x79   : > { %p2010_p13 = scmp.lt.u32.totalorder %s2423_s12, %s3213_s0  ;;  %p2011_p6 = scmp.lt.u32.totalorder %s2009_s18, %s2004_s23 }
  0x7a   : > { %p2007_p2 = pnand %p2005_p7, %p3330_p9  ;;  %p2013_p3 = scmp.lt.u32.totalorder %s2004_s23, %s2423_s12 }
  0x7b   : > { %p2012_p11 = por %p2011_p6, %p2010_p13 }
  0x7c   : > { %p2008_p10 = pneg %p2007_p2 }
  0x7d   : > { %p2014_p8 = por %p2013_p3, %p2012_p11 }
  0x7f   : > { %p2015_p5 = pnand %p2014_p8, %p2008_p10 }
  0x81   : > { %2018 = shalt.err (!%p2015_p5)
}
  0x82   : > { %s2019_s7 = scalar_lea.vmem %s2428_s1, 1024  ;;  %s2163_s14 = smov [#allocation7]  }
  0x83   : > { %p2020_p12 = scmp.ne.s32.totalorder %s2428_s1, %s2019_s7  ;;  %s2024_s19 = sshll.u32 %s2163_s14, 4  ;;  %s2025_s19 = int_to_ptr.vmem [resolvable:$false] %s2024_s19 }
  0x84   : > { %s2026_s20 = scalar_lea.vmem %s2025_s19, 2048  ;;  %p2027_p0 = scmp.lt.s32.totalorder %s2428_s1, %s2025_s19 }
  0x85   : > { %p2022_p1 = pnand %p2020_p12, %p3330_p9  ;;  %p2028_p7 = scmp.lt.s32.totalorder %s2026_s20, %s2019_s7 }
  0x87   : > { %p2023_p4 = pneg %p2022_p1  ;;  %p2029_p2 = por %p2028_p7, %p2027_p0 }
  0x89   : > { %p2030_p13 = pnand %p2029_p2, %p2023_p4 }
  0x8b   : > { %2033 = shalt.err (!%p2030_p13)
}
  0x8c   : > { %p3331_p10 = scmp.ne.s32.totalorder %s3318_s30, 0  ;;  %s3332_s23 = smov 16  }
  0x8d   : > { %s3333_s22 = smov 256   ;;  %s2463_s21 = scalar_lea.hbm %s3215_s2, %s1677_s3 }
  0x8e   : > { %1705 = dma.hbm_to_vmem [thread:$0]  (!%p3331_p10), %s2423_s12, 1024, %s2428_s1, %s269_s29, %s3333_s22, %s3333_s22, %s3332_s23  }
  0x8f   : > { %s318_s7 = scalar_lea.vmem [#allocation12], %s1676_s15  ;;  %s2034_s19 = scalar_lea.hbm %s2463_s21, 1280 }
  0x90   : > { %s327_s14 = sshll.u32 %s318_s7, 4  ;;  %p2035_p6 = scmp.ne.s32.totalorder %s2463_s21, %s2034_s19  ;;  %s2467_s14 = int_to_ptr.vmem [resolvable:$true] %s327_s14 }
  0x91   : > { %s2039_s1 = scalar_lea.hbm %s3215_s2, 2560  ;;  %p2040_p8 = scmp.lt.u32.totalorder %s2463_s21, %s3215_s2 }
  0x92   : > { %p2037_p11 = pnand %p2035_p6, %p3330_p9  ;;  %p2041_p5 = scmp.lt.u32.totalorder %s2039_s1, %s2034_s19 }
  0x93   : > { %p2043_p1 = scmp.lt.u32.totalorder %s2034_s19, %s2463_s21 }
  0x94   : > { %p2038_p3 = pneg %p2037_p11  ;;  %p2042_p12 = por %p2041_p5, %p2040_p8 }
  0x96   : > { %p2044_p4 = por %p2043_p1, %p2042_p12 }
  0x98   : > { %p2045_p0 = pnand %p2044_p4, %p2038_p3 }
  0x9a   : > { %2048 = shalt.err (!%p2045_p0)
}
  0x9b   : > { %s2049_s16 = scalar_lea.vmem %s2467_s14, 1280  ;;  %s2164_s15 = smov [#allocation12]  }
  0x9c   : > { %p2050_p7 = scmp.ne.s32.totalorder %s2467_s14, %s2049_s16  ;;  %s2054_s18 = sshll.u32 %s2164_s15, 4  ;;  %s2055_s18 = int_to_ptr.vmem [resolvable:$false] %s2054_s18 }
  0x9d   : > { %s2056_s17 = scalar_lea.vmem %s2055_s18, 2560  ;;  %p2057_p6 = scmp.lt.s32.totalorder %s2467_s14, %s2055_s18 }
  0x9e   : > { %p2052_p2 = pnand %p2050_p7, %p3330_p9  ;;  %p2058_p11 = scmp.lt.s32.totalorder %s2056_s17, %s2049_s16 }
  0xa0   : > { %p2053_p13 = pneg %p2052_p2  ;;  %p2059_p8 = por %p2058_p11, %p2057_p6 }
  0xa2   : > { %p2060_p5 = pnand %p2059_p8, %p2053_p13 }
  0xa4   : > { %2063 = shalt.err (!%p2060_p5)
}
  0xa5   : > { %1711 = dma.hbm_to_vmem [thread:$0]  (!%p3331_p10), %s2463_s21, 1280, %s2467_s14, %s2361_s10, %s3333_s22, %s3333_s22, %s3332_s23  }
  0xa6   : > { %p3334_p9 = scmp.ne.s32.totalorder %s3312_s11, 0 }
  0xa8   : > { %339 = sbr.rel (%p3334_p9) target bundleno = 1277 (0x4fd), region = 44 }
  0xaf   : > { %s2497_s13 = sand.u32 1, %s2138_s24   ;;  %p3335_p3 = scmp.ne.s32.totalorder %s3308_s8, 0 }
  0xb0   : > { %s2500_s7 = sshll.u32 %s2497_s13, 6  ;;  %s342_s30 = scalar_lea.sflag [#allocation8], %s2497_s13 }
  0xb1   : > { %s2504_s19 = scalar_lea.vmem [#allocation7], %s2500_s7 }
  0xb2   : > { %2117 = dma.done.wait (%p3335_p3), %s342_s30, 1024  }
  0xb3   : > { %2119 = vsyncadd (%p3335_p3), %s342_s30, 4294966272  ;;  %s350_s11 = sand.u32 1, %s2241_s5   ;;  %s2512_s23 = scalar_lea.vmem [#allocation10], %s2500_s7 }
  0xb4   : > { %s351_s10 = scalar_lea.sflag [#allocation11], %s350_s11 }
  0xb5   : > { %2121 = dma.done.wait (%p3335_p3), %s351_s10, 2304  }
  0xb6   : > { %2123 = vsyncadd (%p3335_p3), %s351_s10, 4294964992  ;;  %s1678_s22 = smul.u32 80, %s2497_s13  ;;  %p3336_p10 = scmp.eq.s32.totalorder %s2241_s5, 0 }
  0xb8   : > { %s2519_s21 = scalar_lea.vmem [#allocation12], %s1678_s22 }
  0xb9   : > { %2125 = dma.done.wait (%p3336_p10), [#allocation14], 1024   ;;  %p3337_p12 = pmov %p3336_p10 }
  0xba   : > { %v3242_v0 = vlaneseq  ;;  %v2165_v1 = vmov 0.0   ;;  %v3338_v2 = vmov 0  ;;  %v2166_v3 = vmov -inf   ;;  %v427_v4 = vld [vmem:[#allocation13] sm:$0xff]  ;;  %v428_v5 = vld [vmem:[#allocation13 + $0x8] sm:$0xff]  ;;  %v422_v7 = vld [vmem:[%s2504_s19 + $0x18] sm:$0xff] }
  0xbb   : > { %2127 = vsyncadd (%p3337_p12), [#allocation14], 4294966272  ;;  %564 = vmatprep.mubr.f32.mxu0 %v2165_v1  ;;  %455 = vxpose.xlu0.b32.start [1/4] (short) (narrow) %v427_v4, 32  ;;  %v420_v6 = vld [vmem:[%s2504_s19 + $0x8] sm:$0xff]  ;;  %v419_v9 = vld [vmem:[%s2504_s19] sm:$0xff]  ;;  %v2167_v21 = vmov 0  }
  0xbc   : > { %vm2527_vm0 = vcmp.lt.s32.totalorder %v3242_v0, 256  ;;  %v1668_v8 = vpack.c.bf16 %v422_v7, %v420_v6  ;;  %v421_v10 = vld [vmem:[%s2504_s19 + $0x10] sm:$0xff]  ;;  %v424_v11 = vld [vmem:[%s2504_s19 + $0x28] sm:$0xff]  ;;  %v426_v13 = vld [vmem:[%s2504_s19 + $0x38] sm:$0xff]  ;;  %1782 = vset.pattern.permute.xlu1 %v2167_v21  ;;  %740 = vmatprep.mubr.bf16.mxu1 %v2167_v21  ;;  %vm487_vm1 = vcmask 261120   ;;  %s1413_s5 = sld [smem:[#allocation6]] }
  0xbd   : > { %v3339_v2 = vsel %vm2527_vm0, 4294967295, %v3338_v2  ;;  %601 = vst.msk [vmem:[#allocation3] sm:$0x3] %vm2527_vm0, %v2166_v3  ;;  %602 = vst.msk [vmem:[#allocation4] sm:$0x3] %vm2527_vm0, %v2165_v1  ;;  %v1670_v12 = vpack.c.bf16 %v421_v10, %v419_v9  ;;  %v423_v14 = vld [vmem:[%s2504_s19 + $0x20] sm:$0xff]  ;;  %v1672_v16 = vpack.c.bf16 %v426_v13, %v424_v11 }
  0xbe   : > { %3340 = vst [vmem:[#allocation25_spill] sm:$0xff] %v3339_v2  ;;  %v425_v15 = vld [vmem:[%s2504_s19 + $0x30] sm:$0xff]  ;;  %1669 = vmatprep.subr.bf16.mxu0 %v1668_v8  ;;  %v430_v19 = vld [vmem:[#allocation13 + $0x18] sm:$0xff]  ;;  %v431_v20 = vld [vmem:[#allocation15] sm:$0xff]  ;;  %s1667_s8 = sshll.u32 %s2146_s26, 10  ;;  %s409_s14 = scalar_lea.vmem [#allocation16], %s2500_s7 }
  0xbf   : > { %456 = vxpose.xlu0.b32.cont [2/4] (short) (narrow) %v428_v5, 32  ;;  %1671 = vmatpush1.bf16.msra.mxu0 %v1670_v12  ;;  %v1674_v17 = vpack.c.bf16 %v425_v15, %v423_v14  ;;  %v429_v18 = vld [vmem:[#allocation13 + $0x10] sm:$0xff]  ;;  %v432_v22 = vld [vmem:[#allocation15 + $0x8] sm:$0xff]  ;;  %v434_v24 = vld [vmem:[#allocation15 + $0x18] sm:$0xff]  ;;  %s1463_s29 = sshll.u32 %s409_s14, 4  ;;  %s3162_s1 = scalar_lea.hbm %s3219_s6, %s1667_s8  ;;  %s3164_s29 = int_to_ptr.vmem [resolvable:$true] %s1463_s29 }
  0xc0   : > { %1673 = vmatprep.subr.bf16.mxu0 %v1672_v16  ;;  %437 = vperm.xlu1 %1782, %v431_v20   ;;  %v433_v23 = vld [vmem:[#allocation15 + $0x10] sm:$0xff]  ;;  %v611_v25 = vld [vmem:[%s2512_s23] sm:$0xff]  ;;  %v612_v31 = vld [vmem:[%s2512_s23 + $0x8] sm:$0xff]  ;;  %s1448_s3 = scalar_lea.sflag [#allocation9], %s2497_s13  ;;  %s2064_s20 = scalar_lea.vmem %s3164_s29, 1024 }
  0xc1   : > { %v613_v26 = vld [vmem:[%s2512_s23 + $0x10] sm:$0xff]  ;;  %v615_v28 = vld [vmem:[%s2512_s23 + $0x20] sm:$0xff]  ;;  %v614_v32 = vld [vmem:[%s2512_s23 + $0x18] sm:$0xff]  ;;  %p2065_p1 = scmp.ne.s32.totalorder %s3164_s29, %s2064_s20  ;;  %p3481_p4 = scmp.ne.s32.totalorder %s3309_s9, 0 }
  0xc2   : > { %v619_v27 = vpack.c.bf16 %v613_v26, %v611_v25  ;;  %v617_v29 = vld [vmem:[%s2512_s23 + $0x30] sm:$0xff]  ;;  %v620_v33 = vpack.c.bf16 %v614_v32, %v612_v31  ;;  %v616_v34 = vld [vmem:[%s2512_s23 + $0x28] sm:$0xff]  ;;  %v618_v35 = vld [vmem:[%s2512_s23 + $0x38] sm:$0xff]  ;;  %s2169_s16 = smov [#allocation16]  }
  0xc3   : > { %457 = vxpose.xlu0.b32.cont [3/4] (short) (narrow) %v429_v18, 32  ;;  %1675 = vmatpush1.bf16.msra.mxu0 %v1674_v17  ;;  %v621_v30 = vpack.c.bf16 %v617_v29, %v615_v28  ;;  %v622_v36 = vpack.c.bf16 %v618_v35, %v616_v34  ;;  %p2066_p0 = pnand %p2065_p1, %p3481_p4  ;;  %s2068_s15 = sshll.u32 %s2169_s16, 4  ;;  %s2069_s15 = int_to_ptr.vmem [resolvable:$false] %s2068_s15 }
  0xc4   : > { %442 = vperm.xlu1 %1782, %v432_v22   ;;  %s2070_s18 = scalar_lea.vmem %s2069_s15, 2048  ;;  %p2071_p2 = scmp.lt.s32.totalorder %s3164_s29, %s2069_s15 }
  0xc5   : > { %p2067_p7 = pneg %p2066_p0  ;;  %p2072_p13 = scmp.lt.s32.totalorder %s2070_s18, %s2064_s20 }
  0xc7   : > { %458 = vxpose.xlu0.b32.end [4/4] (short) (narrow) %v430_v19, 32  ;;  %p2073_p6 = por %p2072_p13, %p2071_p2 }
  0xc8   : > { %447 = vperm.xlu1 %1782, %v433_v23  }
  0xc9   : > { %p2074_p11 = pnand %p2073_p6, %p2067_p7 }
  0xcc   : > { %452 = vperm.xlu1 %1782, %v434_v24  }
  0xeb   : > { %627 = vxpose.xlu0.c.b16.start [1/2] (short) %v619_v27, 128 }
  0xef   : > { %628 = vxpose.xlu0.c.b16.end [2/2] (short) %v621_v30, 128  ;;  %643 = vxpose.xlu1.c.b16.start [1/2] (short) %v620_v33, 128 }
  0xf3   : > { %644 = vxpose.xlu1.c.b16.end [2/2] (short) %v622_v36, 128 }
  0xf8   : > { %1783 = vset.pattern.permute.xlu0 %v2167_v21 }
 0x13b   : > { %v471_v37 = vpop.trf.xlu0 }
 0x13c   : > { %1640 = vmatmul.mubr.msk.f32.vlgmr.msra.gmra.mrb[0].mxu0 %vm487_vm1, %v471_v37 }
 0x13d   : > { %570 = vmatprep.mubr.f32.mxu0 %v2165_v1 }
 0x13f   : > { %v472_v38 = vpop.trf.xlu0  ;;  %v438_v41 = vpop.permute.xlu1 %437 }
 0x140   : > { %1641 = vmatmul.mubr.msk.f32.gmra.mrb[2].mxu0 %vm487_vm1, %v472_v38 }
 0x141   : > { %576 = vmatprep.mubr.f32.mxu0 %v2165_v1 }
 0x143   : > { %v473_v39 = vpop.trf.xlu0  ;;  %v443_v42 = vpop.permute.xlu1 %442 }
 0x144   : > { %1642 = vmatmul.mubr.msk.f32.gmra.mrb[4].mxu0 %vm487_vm1, %v473_v39 }
 0x145   : > { %582 = vmatprep.mubr.f32.mxu0 %v2165_v1 }
 0x147   : > { %v474_v40 = vpop.trf.xlu0  ;;  %v448_v49 = vpop.permute.xlu1 %447 }
 0x148   : > { %1643 = vmatmul.mubr.msk.f32.gmra.mrb[6].mxu0 %vm487_vm1, %v474_v40 }
 0x14b   : > { %v453_v56 = vpop.permute.xlu1 %452 }
 0x151   : > { %v635_v3 = vpop.trf.xlu0 }
 0x155   : > { %v636_v4 = vpop.trf.xlu0  ;;  %v651_v11 = vpop.trf.xlu1 }
 0x159   : > { %v637_v5 = vpop.trf.xlu0  ;;  %v652_v12 = vpop.trf.xlu1 }
 0x15d   : > { %v638_v6 = vpop.trf.xlu0  ;;  %v653_v13 = vpop.trf.xlu1 }
 0x161   : > { %v639_v7 = vpop.trf.xlu0  ;;  %v654_v14 = vpop.trf.xlu1 }
 0x165   : > { %v640_v8 = vpop.trf.xlu0  ;;  %v655_v15 = vpop.trf.xlu1 }
 0x169   : > { %v641_v9 = vpop.trf.xlu0  ;;  %v656_v16 = vpop.trf.xlu1 }
 0x16d   : > { %v642_v10 = vpop.trf.xlu0  ;;  %v657_v17 = vpop.trf.xlu1 }
 0x171   : > { %v658_v18 = vpop.trf.xlu1 }
 0x20f   : > { %v566_v43 = vpop.f32.mrb[0].mxu0 }
 0x210   : > { %v568_v44 = vpop.f32.mrb[1].mxu0  ;;  %v567_v46 = vadd.f32 %v566_v43, %v438_v41 }
 0x211   : > { %v569_v50 = vadd.f32 %v568_v44, %v438_v41 }
 0x213   : > { %v572_v45 = vpop.f32.mrb[2].mxu0 }
 0x214   : > { %v573_v47 = vadd.f32 %v572_v45, %v443_v42  ;;  %v574_v48 = vpop.f32.mrb[3].mxu0 }
 0x215   : > { %v575_v51 = vadd.f32 %v574_v48, %v443_v42 }
 0x216   : > { %v589_v52 = vpack.c.bf16 %v573_v47, %v567_v46 }
 0x217   : > { %v578_v53 = vpop.f32.mrb[4].mxu0  ;;  %v590_v54 = vpack.c.bf16 %v575_v51, %v569_v50 }
 0x218   : > { %v580_v55 = vpop.f32.mrb[5].mxu0  ;;  %v579_v58 = vadd.f32 %v578_v53, %v448_v49 }
 0x219   : > { %708 = vmatprep.subr.bf16.mxu1 %v590_v54  ;;  %v581_v61 = vadd.f32 %v580_v55, %v448_v49 }
 0x21a   : > { %709 = vmatpush1.bf16.msra.mxu1 %v589_v52 }
 0x21b   : > { %v584_v57 = vpop.f32.mrb[6].mxu0 }
 0x21c   : > { %v585_v59 = vadd.f32 %v584_v57, %v453_v56  ;;  %v586_v60 = vpop.f32.mrb[7].mxu0 }
 0x21d   : > { %v587_v62 = vadd.f32 %v586_v60, %v453_v56 }
 0x21e   : > { %v591_v63 = vpack.c.bf16 %v585_v59, %v579_v58 }
 0x21f   : > { %v592_v1 = vpack.c.bf16 %v587_v62, %v581_v61 }
 0x221   : > { %710 = vmatprep.subr.bf16.mxu1 %v592_v1 }
 0x222   : > { %711 = vmatpush1.bf16.msra.mxu1 %v591_v63 }
 0x225   : > { %1644 = vmatmul.mubr.msk.bf16.vlgmr.msra.gmra.mrb[0].mxu1 %vm487_vm1, %v635_v3 }
 0x226   : > { %750 = vmatprep.mubr.bf16.mxu1 %v2167_v21 }
 0x22d   : > { %1645 = vmatmul.mubr.msk.bf16.gmra.mrb[4].mxu1 %vm487_vm1, %v636_v4 }
 0x22e   : > { %760 = vmatprep.mubr.bf16.mxu1 %v2167_v21 }
 0x235   : > { %1646 = vmatmul.mubr.msk.bf16.gmra.mrb[8].mxu1 %vm487_vm1, %v637_v5 }
 0x236   : > { %770 = vmatprep.mubr.bf16.mxu1 %v2167_v21 }
 0x23d   : > { %1647 = vmatmul.mubr.msk.bf16.gmra.mrb[12].mxu1 %vm487_vm1, %v638_v6 }
 0x23e   : > { %780 = vmatprep.mubr.bf16.mxu1 %v2167_v21 }
 0x245   : > { %1648 = vmatmul.mubr.msk.bf16.gmra.mrb[16].mxu1 %vm487_vm1, %v639_v7 }
 0x246   : > { %790 = vmatprep.mubr.bf16.mxu1 %v2167_v21 }
 0x24d   : > { %1649 = vmatmul.mubr.msk.bf16.gmra.mrb[20].mxu1 %vm487_vm1, %v640_v8 }
 0x24e   : > { %800 = vmatprep.mubr.bf16.mxu1 %v2167_v21 }
 0x255   : > { %1650 = vmatmul.mubr.msk.bf16.gmra.mrb[24].mxu1 %vm487_vm1, %v641_v9 }
 0x256   : > { %810 = vmatprep.mubr.bf16.mxu1 %v2167_v21 }
 0x25d   : > { %1651 = vmatmul.mubr.msk.bf16.gmra.mrb[28].mxu1 %vm487_vm1, %v642_v10 }
 0x25e   : > { %820 = vmatprep.mubr.bf16.mxu1 %v2167_v21 }
 0x265   : > { %1652 = vmatmul.mubr.msk.bf16.gmra.mrb[32].mxu1 %vm487_vm1, %v651_v11 }
 0x266   : > { %830 = vmatprep.mubr.bf16.mxu1 %v2167_v21 }
 0x26d   : > { %1653 = vmatmul.mubr.msk.bf16.gmra.mrb[36].mxu1 %vm487_vm1, %v652_v12 }
 0x26e   : > { %840 = vmatprep.mubr.bf16.mxu1 %v2167_v21 }
 0x275   : > { %1654 = vmatmul.mubr.msk.bf16.gmra.mrb[40].mxu1 %vm487_vm1, %v653_v13 }
 0x276   : > { %850 = vmatprep.mubr.bf16.mxu1 %v2167_v21 }
 0x27d   : > { %1655 = vmatmul.mubr.msk.bf16.gmra.mrb[44].mxu1 %vm487_vm1, %v654_v14 }
 0x27e   : > { %860 = vmatprep.mubr.bf16.mxu1 %v2167_v21 }
 0x285   : > { %1656 = vmatmul.mubr.msk.bf16.gmra.mrb[48].mxu1 %vm487_vm1, %v655_v15 }
 0x286   : > { %870 = vmatprep.mubr.bf16.mxu1 %v2167_v21 }
 0x28d   : > { %1657 = vmatmul.mubr.msk.bf16.gmra.mrb[52].mxu1 %vm487_vm1, %v656_v16 }
 0x28e   : > { %880 = vmatprep.mubr.bf16.mxu1 %v2167_v21 }
 0x295   : > { %1658 = vmatmul.mubr.msk.bf16.gmra.mrb[56].mxu1 %vm487_vm1, %v657_v17 }
 0x296   : > { %890 = vmatprep.mubr.bf16.mxu1 %v2167_v21 }
 0x29d   : > { %1659 = vmatmul.mubr.msk.bf16.gmra.mrb[60].mxu1 %vm487_vm1, %v658_v18 }
 0x2f8   : > { %v2593_v19 = vpop.f32.mrb[0].mxu1 }
 0x2f9   : > { %v2595_v20 = vpop.f32.mrb[1].mxu1 }
 0x2fa   : > { %v2597_v22 = vpop.f32.mrb[2].mxu1 }
 0x2fb   : > { %v2599_v23 = vpop.f32.mrb[3].mxu1 }
 0x300   : > { %v2601_v24 = vpop.f32.mrb[4].mxu1 }
 0x301   : > { %v902_v25 = vmax.f32 %v2593_v19, %v2601_v24  ;;  %v2605_v26 = vpop.f32.mrb[5].mxu1 }
 0x302   : > { %v939_v21 = vmax.f32 %v2595_v20, %v2605_v26  ;;  %v2609_v27 = vpop.f32.mrb[6].mxu1 }
 0x303   : > { %v903_v28 = vmax.f32 %v2597_v22, %v2609_v27  ;;  %v2613_v29 = vpop.f32.mrb[7].mxu1 }
 0x304   : > { %v940_v30 = vmax.f32 %v2599_v23, %v2613_v29 }
 0x308   : > { %v2617_v31 = vpop.f32.mrb[8].mxu1 }
 0x309   : > { %v904_v32 = vmax.f32 %v902_v25, %v2617_v31  ;;  %v2620_v33 = vpop.f32.mrb[9].mxu1 }
 0x30a   : > { %v941_v34 = vmax.f32 %v939_v21, %v2620_v33  ;;  %v2623_v35 = vpop.f32.mrb[10].mxu1 }
 0x30b   : > { %v905_v36 = vmax.f32 %v903_v28, %v2623_v35  ;;  %v2626_v37 = vpop.f32.mrb[11].mxu1 }
 0x30c   : > { %v942_v38 = vmax.f32 %v940_v30, %v2626_v37 }
 0x310   : > { %v2629_v39 = vpop.f32.mrb[12].mxu1 }
 0x311   : > { %v906_v40 = vmax.f32 %v904_v32, %v2629_v39  ;;  %v2632_v41 = vpop.f32.mrb[13].mxu1 }
 0x312   : > { %v943_v42 = vmax.f32 %v941_v34, %v2632_v41  ;;  %v2635_v43 = vpop.f32.mrb[14].mxu1 }
 0x313   : > { %v907_v44 = vmax.f32 %v905_v36, %v2635_v43  ;;  %v2638_v45 = vpop.f32.mrb[15].mxu1 }
 0x314   : > { %v944_v46 = vmax.f32 %v942_v38, %v2638_v45 }
 0x318   : > { %v2641_v47 = vpop.f32.mrb[16].mxu1 }
 0x319   : > { %v908_v48 = vmax.f32 %v906_v40, %v2641_v47  ;;  %v2644_v49 = vpop.f32.mrb[17].mxu1 }
 0x31a   : > { %v945_v50 = vmax.f32 %v943_v42, %v2644_v49  ;;  %v2647_v51 = vpop.f32.mrb[18].mxu1 }
 0x31b   : > { %v909_v52 = vmax.f32 %v907_v44, %v2647_v51  ;;  %v2650_v53 = vpop.f32.mrb[19].mxu1 }
 0x31c   : > { %v946_v54 = vmax.f32 %v944_v46, %v2650_v53 }
 0x320   : > { %v2653_v55 = vpop.f32.mrb[20].mxu1 }
 0x321   : > { %v910_v56 = vmax.f32 %v908_v48, %v2653_v55  ;;  %v2656_v57 = vpop.f32.mrb[21].mxu1 }
 0x322   : > { %v947_v58 = vmax.f32 %v945_v50, %v2656_v57  ;;  %v2659_v59 = vpop.f32.mrb[22].mxu1 }
 0x323   : > { %v911_v60 = vmax.f32 %v909_v52, %v2659_v59  ;;  %v2662_v61 = vpop.f32.mrb[23].mxu1 }
 0x324   : > { %v948_v62 = vmax.f32 %v946_v54, %v2662_v61 }
 0x328   : > { %v2665_v63 = vpop.f32.mrb[24].mxu1 }
 0x329   : > { %v912_v1 = vmax.f32 %v910_v56, %v2665_v63  ;;  %v2668_v3 = vpop.f32.mrb[25].mxu1 }
 0x32a   : > { %v949_v4 = vmax.f32 %v947_v58, %v2668_v3  ;;  %v2671_v5 = vpop.f32.mrb[26].mxu1 }
 0x32b   : > { %v913_v6 = vmax.f32 %v911_v60, %v2671_v5  ;;  %v2674_v7 = vpop.f32.mrb[27].mxu1 }
 0x32c   : > { %v950_v8 = vmax.f32 %v948_v62, %v2674_v7 }
 0x330   : > { %v2677_v9 = vpop.f32.mrb[28].mxu1 }
 0x331   : > { %v914_v10 = vmax.f32 %v912_v1, %v2677_v9  ;;  %v2680_v11 = vpop.f32.mrb[29].mxu1 }
 0x332   : > { %v951_v12 = vmax.f32 %v949_v4, %v2680_v11  ;;  %v2683_v13 = vpop.f32.mrb[30].mxu1 }
 0x333   : > { %v915_v14 = vmax.f32 %v913_v6, %v2683_v13  ;;  %v2686_v15 = vpop.f32.mrb[31].mxu1 }
 0x334   : > { %v952_v16 = vmax.f32 %v950_v8, %v2686_v15 }
 0x338   : > { %v2689_v17 = vpop.f32.mrb[32].mxu1 }
 0x339   : > { %v916_v18 = vmax.f32 %v914_v10, %v2689_v17  ;;  %v2692_v25 = vpop.f32.mrb[33].mxu1 }
 0x33a   : > { %v953_v21 = vmax.f32 %v951_v12, %v2692_v25  ;;  %v2695_v28 = vpop.f32.mrb[34].mxu1 }
 0x33b   : > { %v917_v30 = vmax.f32 %v915_v14, %v2695_v28  ;;  %v2698_v32 = vpop.f32.mrb[35].mxu1 }
 0x33c   : > { %v954_v34 = vmax.f32 %v952_v16, %v2698_v32 }
 0x340   : > { %v2701_v36 = vpop.f32.mrb[36].mxu1 }
 0x341   : > { %v918_v38 = vmax.f32 %v916_v18, %v2701_v36  ;;  %v2704_v40 = vpop.f32.mrb[37].mxu1 }
 0x342   : > { %3341 = vst [vmem:[#allocation26_spill] sm:$0xff] %v2704_v40  ;;  %v955_v42 = vmax.f32 %v953_v21, %v2704_v40  ;;  %v2707_v44 = vpop.f32.mrb[38].mxu1 }
 0x343   : > { %3342 = vst [vmem:[#allocation27_spill] sm:$0xff] %v2707_v44  ;;  %v919_v46 = vmax.f32 %v917_v30, %v2707_v44  ;;  %v2710_v48 = vpop.f32.mrb[39].mxu1 }
 0x344   : > { %3343 = vst [vmem:[#allocation28_spill] sm:$0xff] %v2710_v48  ;;  %v956_v50 = vmax.f32 %v954_v34, %v2710_v48 }
 0x348   : > { %v2713_v52 = vpop.f32.mrb[40].mxu1 }
 0x349   : > { %3344 = vst [vmem:[#allocation29_spill] sm:$0xff] %v2713_v52  ;;  %v920_v54 = vmax.f32 %v918_v38, %v2713_v52  ;;  %v2716_v56 = vpop.f32.mrb[41].mxu1  ;;  %v3367_v52 = vlaneseq }
 0x34a   : > { %3345 = vst [vmem:[#allocation30_spill] sm:$0xff] %v2716_v56  ;;  %v957_v58 = vmax.f32 %v955_v42, %v2716_v56  ;;  %v2719_v60 = vpop.f32.mrb[42].mxu1 }
 0x34b   : > { %3346 = vst [vmem:[#allocation31_spill] sm:$0xff] %v2719_v60  ;;  %v921_v62 = vmax.f32 %v919_v46, %v2719_v60  ;;  %v2722_v1 = vpop.f32.mrb[43].mxu1  ;;  %v983_v48 = vshrl.u32 %v3367_v52, 7 }
 0x34c   : > { %3347 = vst [vmem:[#allocation32_spill] sm:$0xff] %v2722_v1  ;;  %v958_v4 = vmax.f32 %v956_v50, %v2722_v1 }
 0x350   : > { %v2725_v6 = vpop.f32.mrb[44].mxu1 }
 0x351   : > { %3348 = vst [vmem:[#allocation33_spill] sm:$0xff] %v2725_v6  ;;  %v922_v8 = vmax.f32 %v920_v54, %v2725_v6  ;;  %v2728_v10 = vpop.f32.mrb[45].mxu1 }
 0x352   : > { %3349 = vst [vmem:[#allocation34_spill] sm:$0xff] %v2728_v10  ;;  %v959_v12 = vmax.f32 %v957_v58, %v2728_v10  ;;  %v2731_v14 = vpop.f32.mrb[46].mxu1 }
 0x353   : > { %3350 = vst [vmem:[#allocation35_spill] sm:$0xff] %v2731_v14  ;;  %v923_v16 = vmax.f32 %v921_v62, %v2731_v14  ;;  %v2734_v18 = vpop.f32.mrb[47].mxu1  ;;  %v1236_v14 = vld [vmem:[%s2519_s21 + $0x18] sm:$0xff] }
 0x354   : > { %3351 = vst [vmem:[#allocation36_spill] sm:$0xff] %v2734_v18  ;;  %v960_v21 = vmax.f32 %v958_v4, %v2734_v18  ;;  %v1234_v18 = vld [vmem:[%s2519_s21 + $0x8] sm:$0xff] }
 0x358   : > { %v2737_v30 = vpop.f32.mrb[48].mxu1 }
 0x359   : > { %3352 = vst [vmem:[#allocation37_spill] sm:$0xff] %v2737_v30  ;;  %v924_v34 = vmax.f32 %v922_v8, %v2737_v30  ;;  %v2740_v38 = vpop.f32.mrb[49].mxu1 }
 0x35a   : > { %3353 = vst [vmem:[#allocation38_spill] sm:$0xff] %v2740_v38  ;;  %v961_v42 = vmax.f32 %v959_v12, %v2740_v38  ;;  %v2743_v46 = vpop.f32.mrb[50].mxu1 }
 0x35b   : > { %3354 = vst [vmem:[#allocation39_spill] sm:$0xff] %v2743_v46  ;;  %v925_v50 = vmax.f32 %v923_v16, %v2743_v46  ;;  %v2746_v54 = vpop.f32.mrb[51].mxu1 }
 0x35c   : > { %3355 = vst [vmem:[#allocation40_spill] sm:$0xff] %v2746_v54  ;;  %v962_v58 = vmax.f32 %v960_v21, %v2746_v54 }
 0x360   : > { %v2749_v62 = vpop.f32.mrb[52].mxu1 }
 0x361   : > { %3356 = vst [vmem:[#allocation41_spill] sm:$0xff] %v2749_v62  ;;  %v926_v4 = vmax.f32 %v924_v34, %v2749_v62  ;;  %v2752_v0 = vpop.f32.mrb[53].mxu1 }
 0x362   : > { %3357 = vst [vmem:[#allocation42_spill] sm:$0xff] %v2752_v0  ;;  %v963_v8 = vmax.f32 %v961_v42, %v2752_v0  ;;  %v2755_v30 = vpop.f32.mrb[54].mxu1 }
 0x363   : > { %3358 = vst [vmem:[#allocation43_spill] sm:$0xff] %v2755_v30  ;;  %v927_v12 = vmax.f32 %v925_v50, %v2755_v30  ;;  %v2758_v38 = vpop.f32.mrb[55].mxu1 }
 0x364   : > { %3359 = vst [vmem:[#allocation44_spill] sm:$0xff] %v2758_v38  ;;  %v964_v16 = vmax.f32 %v962_v58, %v2758_v38 }
 0x368   : > { %v2761_v46 = vpop.f32.mrb[56].mxu1 }
 0x369   : > { %3360 = vst [vmem:[#allocation45_spill] sm:$0xff] %v2761_v46  ;;  %v928_v21 = vmax.f32 %v926_v4, %v2761_v46  ;;  %v2764_v54 = vpop.f32.mrb[57].mxu1 }
 0x36a   : > { %3361 = vst [vmem:[#allocation46_spill] sm:$0xff] %v2764_v54  ;;  %v965_v34 = vmax.f32 %v963_v8, %v2764_v54  ;;  %v2767_v62 = vpop.f32.mrb[58].mxu1 }
 0x36b   : > { %3362 = vst [vmem:[#allocation47_spill] sm:$0xff] %v2767_v62  ;;  %v929_v42 = vmax.f32 %v927_v12, %v2767_v62  ;;  %v2770_v0 = vpop.f32.mrb[59].mxu1  ;;  %v1244_v62 = vpack.c.bf16 %v1236_v14, %v1234_v18 }
 0x36c   : > { %3363 = vst [vmem:[#allocation48_spill] sm:$0xff] %v2770_v0  ;;  %v966_v50 = vmax.f32 %v964_v16, %v2770_v0 }
 0x36d   : > { %1281 = vmatprep.mubr.bf16.mxu0 %v1244_v62 }
 0x370   : > { %v2773_v30 = vpop.f32.mrb[60].mxu1 }
 0x371   : > { %3364 = vst [vmem:[#allocation49_spill] sm:$0xff] %v2773_v30  ;;  %v930_v58 = vmax.f32 %v928_v21, %v2773_v30  ;;  %v2776_v38 = vpop.f32.mrb[61].mxu1  ;;  %v2168_v30 = vmov 1966171168  }
 0x372   : > { %3365 = vst [vmem:[#allocation50_spill] sm:$0xff] %v2776_v38  ;;  %v967_v4 = vmax.f32 %v965_v34, %v2776_v38  ;;  %v2779_v46 = vpop.f32.mrb[62].mxu1  ;;  %v980_v60 = vunpack.c.l.s4 %v2168_v30 }
 0x373   : > { %3366 = vst [vmem:[#allocation51_spill] sm:$0xff] %v2779_v46  ;;  %v931_v8 = vmax.f32 %v929_v42, %v2779_v46  ;;  %v898_v54 = vpop.f32.mrb[63].mxu1 }
 0x374   : > { %v968_v12 = vmax.f32 %v966_v50, %v898_v54  ;;  %v981_v46 = vunpack.c.0.s8 %v980_v60 }
 0x375   : > { %v932_v10 = vmax.f32 %v930_v58, %v931_v8 }
 0x376   : > { %v969_v6 = vmax.f32 %v967_v4, %v968_v12  ;;  %v2785_v18 = vsub.s32 %v981_v46, %v983_v48 }
 0x377   : > { %v933_v16 = vrot.slane %v932_v10, 4 }
 0x378   : > { %v970_v0 = vrot.slane %v969_v6, 4  ;;  %3368 = vst [vmem:[#allocation52_spill] sm:$0xff] %v2785_v18 }
 0x379   : > { %v934_v1 = vmax.f32 %v932_v10, %v933_v16  ;;  %v2788_v10 = vld [vmem:[#allocation3] sm:$0x3]  ;;  %v3382_v16 = vld [vmem:[#allocation35_spill] sm:$0xff]  ;;  %v3397_v12 = vld [vmem:[#allocation50_spill] sm:$0xff] }
 0x37a   : > { %v971_v21 = vmax.f32 %v969_v6, %v970_v0  ;;  %3369 = vst [vmem:[#allocation53_spill] sm:$0xff] %v2788_v10  ;;  %v2790_v0 = vsub.s32 0, %v983_v48  ;;  %v2792_v6 = vsub.s32 1, %v983_v48 }
 0x37b   : > { %v935_v56 = vrot.slane %v934_v1, 2 }
 0x37c   : > { %v972_v34 = vrot.slane %v971_v21, 2  ;;  %3370 = vst [vmem:[#allocation54_spill] sm:$0xff] %v2790_v0  ;;  %3371 = vst [vmem:[#allocation55_spill] sm:$0xff] %v2792_v6 }
 0x37d   : > { %v936_v38 = vmax.f32 %v934_v1, %v935_v56 }
 0x37e   : > { %v973_v42 = vmax.f32 %v971_v21, %v972_v34  ;;  %v3374_v34 = vld [vmem:[#allocation27_spill] sm:$0xff]  ;;  %v3381_v21 = vld [vmem:[#allocation34_spill] sm:$0xff] }
 0x37f   : > { %v937_v44 = vrot.slane %v936_v38, 1 }
 0x380   : > { %v974_v40 = vrot.slane %v973_v42, 1 }
 0x381   : > { %v938_v50 = vmax.f32 %v936_v38, %v937_v44  ;;  %v3373_v44 = vld [vmem:[#allocation26_spill] sm:$0xff] }
 0x382   : > { %v975_v14 = vmax.f32 %v973_v42, %v974_v40  ;;  %v3380_v42 = vld [vmem:[#allocation33_spill] sm:$0xff] }
 0x384   : > { %v978_v62 = vcombine.low %v938_v50, %v975_v14  ;;  %v3376_v14 = vld [vmem:[#allocation29_spill] sm:$0xff] }
 0x386   : > { %v985_v58 = vrot.slane %v978_v62, %v2785_v18  ;;  %v3377_v62 = vld [vmem:[#allocation30_spill] sm:$0xff] }
 0x388   : > { %v992_v56 = vrot.slane %v985_v58, %v2785_v18  ;;  %v3378_v58 = vld [vmem:[#allocation31_spill] sm:$0xff] }
 0x38a   : > { %v2796_v52 = vmax.f32 %v2788_v10, %v992_v56  ;;  %v3379_v56 = vld [vmem:[#allocation32_spill] sm:$0xff]  ;;  %v3396_v10 = vld [vmem:[#allocation49_spill] sm:$0xff] }
 0x38c   : > { %3372 = vst [vmem:[#allocation56_spill] sm:$0xff] %v2796_v52  ;;  %v2802_v40 = vrot.slane %v2796_v52, %v2790_v0  ;;  %v2806_v60 = vrot.slane %v2796_v52, %v2792_v6  ;;  %1379 = vst.msk [vmem:[#allocation3] sm:$0x3] %vm2527_vm0, %v2796_v52  ;;  %v3393_v6 = vld [vmem:[#allocation46_spill] sm:$0xff]  ;;  %v3394_v0 = vld [vmem:[#allocation47_spill] sm:$0xff] }
 0x38e   : > { %v1072_v48 = vsub.f32 %v898_v54, %v2806_v60  ;;  %v3399_v8 = vsub.f32 %v2593_v19, %v2802_v40  ;;  %v3400_v4 = vsub.f32 %v2595_v20, %v2806_v60  ;;  %v3401_v38 = vsub.f32 %v2597_v22, %v2802_v40 }
 0x38f   : > { %v3402_v30 = vsub.f32 %v2599_v23, %v2806_v60  ;;  %v3403_v2 = vsub.f32 %v2601_v24, %v2802_v40  ;;  %v3404_v19 = vsub.f32 %v2605_v26, %v2806_v60  ;;  %v3405_v22 = vsub.f32 %v2609_v27, %v2802_v40 }
 0x390   : > { %v1199_v50 = vmul.f32 1.442695, %v1072_v48  ;;  %v3375_v48 = vld [vmem:[#allocation28_spill] sm:$0xff]  ;;  %v1073_v18 = vmul.f32 1.442695, %v3399_v8  ;;  %v3406_v23 = vsub.f32 %v2613_v29, %v2806_v60  ;;  %v3407_v24 = vsub.f32 %v2617_v31, %v2802_v40 }
 0x391   : > { %v1075_v46 = vmul.f32 1.442695, %v3400_v4  ;;  %v1077_v52 = vmul.f32 1.442695, %v3401_v38  ;;  %v1079_v1 = vmul.f32 1.442695, %v3402_v30  ;;  %v3408_v26 = vsub.f32 %v2620_v33, %v2806_v60 }
 0x392   : > { %1784 = vpow2.f32 %v1199_v50  ;;  %v1081_v54 = vmul.f32 1.442695, %v3403_v2  ;;  %v1083_v20 = vmul.f32 1.442695, %v3404_v19  ;;  %v1085_v38 = vmul.f32 1.442695, %v3405_v22 }
 0x393   : > { %1786 = vpow2.f32 %v1073_v18  ;;  %v1087_v30 = vmul.f32 1.442695, %v3406_v23  ;;  %v1089_v2 = vmul.f32 1.442695, %v3407_v24  ;;  %v1091_v18 = vmul.f32 1.442695, %v3408_v26 }
 0x394   : > { %1788 = vpow2.f32 %v1075_v46  ;;  %v3409_v27 = vsub.f32 %v2623_v35, %v2802_v40  ;;  %v3410_v29 = vsub.f32 %v2626_v37, %v2806_v60  ;;  %v3411_v31 = vsub.f32 %v2629_v39, %v2802_v40 }
 0x395   : > { %1790 = vpow2.f32 %v1077_v52  ;;  %v3412_v33 = vsub.f32 %v2632_v41, %v2806_v60  ;;  %v3413_v35 = vsub.f32 %v2635_v43, %v2802_v40  ;;  %v3414_v19 = vsub.f32 %v2638_v45, %v2806_v60 }
 0x396   : > { %1792 = vpow2.f32 %v1079_v1  ;;  %v1093_v52 = vmul.f32 1.442695, %v3409_v27  ;;  %v1095_v1 = vmul.f32 1.442695, %v3410_v29  ;;  %v1097_v46 = vmul.f32 1.442695, %v3411_v31 }
 0x397   : > { %1794 = vpow2.f32 %v1081_v54  ;;  %v1099_v8 = vmul.f32 1.442695, %v3412_v33  ;;  %v1101_v50 = vmul.f32 1.442695, %v3413_v35  ;;  %v1103_v39 = vmul.f32 1.442695, %v3414_v19 }
 0x398   : > { %1796 = vpow2.f32 %v1083_v20  ;;  %v3415_v22 = vsub.f32 %v2641_v47, %v2802_v40  ;;  %v3416_v23 = vsub.f32 %v2644_v49, %v2806_v60  ;;  %v3417_v24 = vsub.f32 %v2647_v51, %v2802_v40 }
 0x399   : > { %1798 = vpow2.f32 %v1085_v38  ;;  %v3418_v26 = vsub.f32 %v2650_v53, %v2806_v60  ;;  %v3419_v27 = vsub.f32 %v2653_v55, %v2802_v40  ;;  %v3420_v29 = vsub.f32 %v2656_v57, %v2806_v60 }
 0x39a   : > { %1800 = vpow2.f32 %v1087_v30  ;;  %v1105_v38 = vmul.f32 1.442695, %v3415_v22  ;;  %v1107_v30 = vmul.f32 1.442695, %v3416_v23  ;;  %v3421_v31 = vsub.f32 %v2659_v59, %v2802_v40 }
 0x39b   : > { %1802 = vpow2.f32 %v1089_v2  ;;  %v1109_v2 = vmul.f32 1.442695, %v3417_v24  ;;  %v3422_v53 = vsub.f32 %v2662_v61, %v2806_v60  ;;  %v3423_v57 = vsub.f32 %v2665_v63, %v2802_v40 }
 0x39c   : > { %v2977_v4 = vpop.eup %1784  ;;  %1804 = vpow2.f32 %v1091_v18  ;;  %v1111_v18 = vmul.f32 1.442695, %v3418_v26  ;;  %v3424_v59 = vsub.f32 %v2668_v3, %v2806_v60  ;;  %v3426_v63 = vsub.f32 %v2674_v7, %v2806_v60 }
 0x39d   : > { %v1787_v54 = vpop.eup %1786  ;;  %1806 = vpow2.f32 %v1093_v52  ;;  %v1113_v52 = vmul.f32 1.442695, %v3419_v27  ;;  %v1119_v33 = vmul.f32 1.442695, %v3422_v53  ;;  %v3427_v3 = vsub.f32 %v2677_v9, %v2802_v40 }
 0x39e   : > { %v1789_v37 = vpop.eup %1788  ;;  %1808 = vpow2.f32 %v1095_v1  ;;  %v1115_v1 = vmul.f32 1.442695, %v3420_v29  ;;  %v1123_v23 = vmul.f32 1.442695, %v3424_v59  ;;  %v3429_v7 = vsub.f32 %v2683_v13, %v2802_v40 }
 0x39f   : > { %v1791_v20 = vpop.eup %1790  ;;  %1810 = vpow2.f32 %v1097_v46  ;;  %v1117_v46 = vmul.f32 1.442695, %v3421_v31  ;;  %v3430_v9 = vsub.f32 %v2686_v15, %v2806_v60  ;;  %v3432_v13 = vsub.f32 %v2692_v25, %v2806_v60 }
 0x3a0   : > { %v1793_v41 = vpop.eup %1792  ;;  %1812 = vpow2.f32 %v1099_v8  ;;  %v1201_v35 = vpack.c.bf16 %v1791_v20, %v1787_v54  ;;  %v3425_v54 = vsub.f32 %v2671_v5, %v2802_v40  ;;  %v3428_v5 = vsub.f32 %v2680_v11, %v2806_v60 }
 0x3a1   : > { %v1795_v43 = vpop.eup %1794  ;;  %1814 = vpow2.f32 %v1101_v50  ;;  %v1202_v55 = vpack.c.bf16 %v1793_v41, %v1789_v37  ;;  %v1133_v27 = vmul.f32 1.442695, %v3429_v7  ;;  %v1135_v29 = vmul.f32 1.442695, %v3430_v9 }
 0x3a2   : > { %v1797_v45 = vpop.eup %1796  ;;  %1816 = vpow2.f32 %v1103_v39  ;;  %v1121_v39 = vmul.f32 1.442695, %v3423_v57  ;;  %v1125_v37 = vmul.f32 1.442695, %v3425_v54  ;;  %v1131_v26 = vmul.f32 1.442695, %v3428_v5 }
 0x3a3   : > { %v1799_v47 = vpop.eup %1798  ;;  %1818 = vpow2.f32 %v1105_v38  ;;  %1249 = vmatprep.subr.bf16.mxu0 %v1202_v55  ;;  %v3431_v11 = vsub.f32 %v2689_v17, %v2802_v40  ;;  %v3433_v15 = vsub.f32 %v2695_v28, %v2802_v40  ;;  %v3434_v17 = vsub.f32 %v2698_v32, %v2806_v60 }
 0x3a4   : > { %v1801_v49 = vpop.eup %1800  ;;  %1820 = vpow2.f32 %v1107_v30  ;;  %v1203_v22 = vpack.c.bf16 %v1799_v47, %v1795_v43  ;;  %1250 = vmatpush1.bf16.msra.mxu0 %v1201_v35  ;;  %v1127_v43 = vmul.f32 1.442695, %v3426_v63  ;;  %v3435_v25 = vsub.f32 %v2701_v36, %v2802_v40 }
 0x3a5   : > { %v1803_v51 = vpop.eup %1802  ;;  %1822 = vpow2.f32 %v1109_v2  ;;  %v1204_v50 = vpack.c.bf16 %v1801_v49, %v1797_v45  ;;  %v1129_v2 = vmul.f32 1.442695, %v3427_v3  ;;  %v3436_v28 = vsub.f32 %v3373_v44, %v2806_v60 }
 0x3a6   : > { %v1805_v8 = vpop.eup %1804  ;;  %1824 = vpow2.f32 %v1111_v18  ;;  %v1145_v57 = vmul.f32 1.442695, %v3435_v25  ;;  %v3437_v32 = vsub.f32 %v3374_v34, %v2802_v40  ;;  %v3438_v36 = vsub.f32 %v3375_v48, %v2806_v60  ;;  %v3454_v25 = vld [vmem:[#allocation40_spill] sm:$0xff] }
 0x3a7   : > { %v1807_v19 = vpop.eup %1806  ;;  %1826 = vpow2.f32 %v1113_v52  ;;  %1251 = vmatprep.subr.bf16.mxu0 %v1204_v50  ;;  %v1143_v50 = vmul.f32 1.442695, %v3434_v17  ;;  %v3439_v44 = vsub.f32 %v3376_v14, %v2802_v40  ;;  %v3440_v34 = vsub.f32 %v3377_v62, %v2806_v60 }
 0x3a8   : > { %v1809_v38 = vpop.eup %1808  ;;  %1828 = vpow2.f32 %v1115_v1  ;;  %v1205_v61 = vpack.c.bf16 %v1807_v19, %v1803_v51  ;;  %1252 = vmatpush1.bf16.msra.mxu0 %v1203_v22  ;;  %v1137_v51 = vmul.f32 1.442695, %v3431_v11  ;;  %v1147_v22 = vmul.f32 1.442695, %v3436_v28 }
 0x3a9   : > { %v1811_v30 = vpop.eup %1810  ;;  %1830 = vpow2.f32 %v1117_v46  ;;  %v1206_v20 = vpack.c.bf16 %v1809_v38, %v1805_v8  ;;  %v1139_v46 = vmul.f32 1.442695, %v3432_v13  ;;  %v1141_v8 = vmul.f32 1.442695, %v3433_v15 }
 0x3aa   : > { %v1813_v41 = vpop.eup %1812  ;;  %1832 = vpow2.f32 %v1119_v33  ;;  %v1151_v54 = vmul.f32 1.442695, %v3438_v36  ;;  %v1155_v63 = vmul.f32 1.442695, %v3440_v34  ;;  %v3441_v48 = vsub.f32 %v3378_v58, %v2802_v40 }
 0x3ab   : > { %v1815_v24 = vpop.eup %1814  ;;  %1834 = vpow2.f32 %v1121_v39  ;;  %1253 = vmatprep.subr.bf16.mxu0 %v1206_v20  ;;  %v1153_v20 = vmul.f32 1.442695, %v3439_v44  ;;  %v3442_v14 = vsub.f32 %v3379_v56, %v2806_v60  ;;  %v3443_v62 = vsub.f32 %v3380_v42, %v2802_v40 }
 0x3ac   : > { %v1817_v45 = vpop.eup %1816  ;;  %1836 = vpow2.f32 %v1123_v23  ;;  %v1207_v18 = vpack.c.bf16 %v1815_v24, %v1811_v30  ;;  %1254 = vmatpush1.bf16.msra.mxu0 %v1205_v61  ;;  %v1149_v23 = vmul.f32 1.442695, %v3437_v32  ;;  %v1157_v3 = vmul.f32 1.442695, %v3441_v48 }
 0x3ad   : > { %v1819_v47 = vpop.eup %1818  ;;  %1838 = vpow2.f32 %v1125_v37  ;;  %v1208_v52 = vpack.c.bf16 %v1817_v45, %v1813_v41  ;;  %v1159_v5 = vmul.f32 1.442695, %v3442_v14  ;;  %v3444_v58 = vsub.f32 %v3381_v21, %v2806_v60  ;;  %v3448_v21 = vld [vmem:[#allocation37_spill] sm:$0xff] }
 0x3ae   : > { %v1821_v49 = vpop.eup %1820  ;;  %1840 = vpow2.f32 %v1127_v43  ;;  %v3445_v56 = vsub.f32 %v3382_v16, %v2802_v40 }
 0x3af   : > { %v1823_v1 = vpop.eup %1822  ;;  %1842 = vpow2.f32 %v1129_v2  ;;  %1255 = vmatprep.subr.bf16.mxu0 %v1208_v52  ;;  %v1163_v7 = vmul.f32 1.442695, %v3444_v58 }
 0x3b0   : > { %v1825_v31 = vpop.eup %1824  ;;  %1844 = vpow2.f32 %v1131_v26  ;;  %v1209_v53 = vpack.c.bf16 %v1823_v1, %v1819_v47  ;;  %1256 = vmatpush1.bf16.msra.mxu0 %v1207_v18  ;;  %v1161_v18 = vmul.f32 1.442695, %v3443_v62  ;;  %v3446_v1 = vld [vmem:[#allocation36_spill] sm:$0xff] }
 0x3b1   : > { %v1827_v33 = vpop.eup %1826  ;;  %1846 = vpow2.f32 %v1133_v27  ;;  %v1210_v55 = vpack.c.bf16 %v1825_v31, %v1821_v49  ;;  %v1165_v49 = vmul.f32 1.442695, %v3445_v56  ;;  %v3447_v42 = vsub.f32 %v3446_v1, %v2806_v60 }
 0x3b2   : > { %v1829_v35 = vpop.eup %1828  ;;  %1848 = vpow2.f32 %v1135_v29  ;;  %v3449_v31 = vsub.f32 %v3448_v21, %v2802_v40  ;;  %v3472_v21 = vld [vmem:[#allocation51_spill] sm:$0xff] }
 0x3b3   : > { %v1831_v19 = vpop.eup %1830  ;;  %1850 = vpow2.f32 %v1137_v51  ;;  %1257 = vmatprep.subr.bf16.mxu0 %v1210_v55  ;;  %v1167_v11 = vmul.f32 1.442695, %v3447_v42  ;;  %v3452_v55 = vld [vmem:[#allocation39_spill] sm:$0xff] }
 0x3b4   : > { %v1833_v39 = vpop.eup %1832  ;;  %1852 = vpow2.f32 %v1139_v46  ;;  %v1211_v38 = vpack.c.bf16 %v1831_v19, %v1827_v33  ;;  %1258 = vmatpush1.bf16.msra.mxu0 %v1209_v53  ;;  %v1169_v13 = vmul.f32 1.442695, %v3449_v31  ;;  %v3450_v53 = vld [vmem:[#allocation38_spill] sm:$0xff]  ;;  %v3473_v31 = vsub.f32 %v3472_v21, %v2802_v40 }
 0x3b5   : > { %v1835_v59 = vpop.eup %1834  ;;  %1854 = vpow2.f32 %v1141_v8  ;;  %v1212_v61 = vpack.c.bf16 %v1833_v39, %v1829_v35  ;;  %v3451_v16 = vsub.f32 %v3450_v53, %v2806_v60  ;;  %v3453_v35 = vsub.f32 %v3452_v55, %v2802_v40 }
 0x3b6   : > { %v1837_v30 = vpop.eup %1836  ;;  %1856 = vpow2.f32 %v1143_v50 }
 0x3b7   : > { %v1839_v37 = vpop.eup %1838  ;;  %1858 = vpow2.f32 %v1145_v57  ;;  %1259 = vmatprep.subr.bf16.mxu0 %v1212_v61  ;;  %v1171_v33 = vmul.f32 1.442695, %v3451_v16  ;;  %v1173_v17 = vmul.f32 1.442695, %v3453_v35  ;;  %v3455_v57 = vsub.f32 %v3454_v25, %v2806_v60 }
 0x3b8   : > { %v1841_v41 = vpop.eup %1840  ;;  %1860 = vpow2.f32 %v1147_v22  ;;  %v1213_v43 = vpack.c.bf16 %v1839_v37, %v1835_v59  ;;  %1260 = vmatpush1.bf16.msra.mxu0 %v1211_v38  ;;  %v3456_v22 = vld [vmem:[#allocation41_spill] sm:$0xff]  ;;  %v3460_v37 = vld [vmem:[#allocation43_spill] sm:$0xff] }
 0x3b9   : > { %v1843_v24 = vpop.eup %1842  ;;  %1862 = vpow2.f32 %v1149_v23  ;;  %v1214_v2 = vpack.c.bf16 %v1841_v41, %v1837_v30  ;;  %v1175_v39 = vmul.f32 1.442695, %v3455_v57  ;;  %v3457_v38 = vsub.f32 %v3456_v22, %v2802_v40  ;;  %v3458_v23 = vld [vmem:[#allocation42_spill] sm:$0xff] }
 0x3ba   : > { %v1845_v45 = vpop.eup %1844  ;;  %1864 = vpow2.f32 %v1151_v54  ;;  %v3459_v61 = vsub.f32 %v3458_v23, %v2806_v60  ;;  %v3461_v44 = vsub.f32 %v3460_v37, %v2802_v40  ;;  %v1233_v23 = vld [vmem:[%s2519_s21] sm:$0xff] }
 0x3bb   : > { %v1847_v26 = vpop.eup %1846  ;;  %1866 = vpow2.f32 %v1153_v20  ;;  %1261 = vmatprep.subr.bf16.mxu0 %v1214_v2  ;;  %v1177_v59 = vmul.f32 1.442695, %v3457_v38 }
 0x3bc   : > { %v1849_v47 = vpop.eup %1848  ;;  %1868 = vpow2.f32 %v1155_v63  ;;  %v1215_v27 = vpack.c.bf16 %v1847_v26, %v1843_v24  ;;  %1262 = vmatpush1.bf16.msra.mxu0 %v1213_v43  ;;  %v1179_v30 = vmul.f32 1.442695, %v3459_v61  ;;  %v1181_v20 = vmul.f32 1.442695, %v3461_v44  ;;  %v3462_v63 = vld [vmem:[#allocation44_spill] sm:$0xff]  ;;  %v1235_v61 = vld [vmem:[%s2519_s21 + $0x10] sm:$0xff] }
 0x3bd   : > { %v1851_v52 = vpop.eup %1850  ;;  %1870 = vpow2.f32 %v1157_v3  ;;  %v1216_v9 = vpack.c.bf16 %v1849_v47, %v1845_v45  ;;  %v3463_v43 = vsub.f32 %v3462_v63, %v2806_v60  ;;  %v3464_v3 = vld [vmem:[#allocation45_spill] sm:$0xff]  ;;  %v3467_v47 = vsub.f32 %v3394_v0, %v2802_v40 }
 0x3be   : > { %v1853_v29 = vpop.eup %1852  ;;  %1872 = vpow2.f32 %v1159_v5  ;;  %v3465_v2 = vsub.f32 %v3464_v3, %v2802_v40  ;;  %v3466_v5 = vsub.f32 %v3393_v6, %v2806_v60  ;;  %v3470_v6 = vsub.f32 %v3396_v10, %v2802_v40  ;;  %v1237_v44 = vld [vmem:[%s2519_s21 + $0x20] sm:$0xff] }
 0x3bf   : > { %v1855_v51 = vpop.eup %1854  ;;  %1874 = vpow2.f32 %v1161_v18  ;;  %1263 = vmatprep.subr.bf16.mxu0 %v1216_v9  ;;  %v1183_v24 = vmul.f32 1.442695, %v3463_v43  ;;  %v1189_v58 = vmul.f32 1.442695, %v3467_v47  ;;  %v3471_v0 = vsub.f32 %v3397_v12, %v2806_v60  ;;  %v1241_v63 = vld [vmem:[%s2519_s21 + $0x40] sm:$0x1] }
 0x3c0   : > { %v1857_v46 = vpop.eup %1856  ;;  %1876 = vpow2.f32 %v1163_v7  ;;  %v1217_v15 = vpack.c.bf16 %v1855_v51, %v1851_v52  ;;  %1264 = vmatpush1.bf16.msra.mxu0 %v1215_v27  ;;  %v1185_v45 = vmul.f32 1.442695, %v3465_v2  ;;  %v1187_v26 = vmul.f32 1.442695, %v3466_v5  ;;  %v3468_v52 = vld [vmem:[#allocation48_spill] sm:$0xff] }
 0x3c1   : > { %v1859_v8 = vpop.eup %1858  ;;  %1878 = vpow2.f32 %v1165_v49  ;;  %v1218_v50 = vpack.c.bf16 %v1857_v46, %v1853_v29  ;;  %v3469_v56 = vsub.f32 %v3468_v52, %v2806_v60  ;;  %v1193_v29 = vmul.f32 1.442695, %v3470_v6 }
 0x3c2   : > { %v1861_v19 = vpop.eup %1860  ;;  %1880 = vpow2.f32 %v1167_v11  ;;  %v1195_v42 = vmul.f32 1.442695, %v3471_v0  ;;  %v1247_v43 = vpack.c.bf16 %v1241_v63, %v1241_v63  ;;  %v1426_v63 = vld [vmem:[%s2504_s19 + $0x18] sm:$0xff] }
 0x3c3   : > { %v1863_v28 = vpop.eup %1862  ;;  %1882 = vpow2.f32 %v1169_v13  ;;  %1265 = vmatprep.subr.bf16.mxu0 %v1218_v50  ;;  %v1191_v49 = vmul.f32 1.442695, %v3469_v56  ;;  %v1197_v13 = vmul.f32 1.442695, %v3473_v31 }
 0x3c4   : > { %v1865_v32 = vpop.eup %1864  ;;  %1884 = vpow2.f32 %v1171_v33  ;;  %v1219_v36 = vpack.c.bf16 %v1863_v28, %v1859_v8  ;;  %1266 = vmatpush1.bf16.msra.mxu0 %v1217_v15 }
 0x3c5   : > { %v1867_v54 = vpop.eup %1866  ;;  %1886 = vpow2.f32 %v1173_v17  ;;  %v1220_v41 = vpack.c.bf16 %v1865_v32, %v1861_v19 }
 0x3c6   : > { %v1869_v34 = vpop.eup %1868  ;;  %1888 = vpow2.f32 %v1175_v39 }
 0x3c7   : > { %v1871_v48 = vpop.eup %1870  ;;  %1890 = vpow2.f32 %v1177_v59  ;;  %1267 = vmatprep.subr.bf16.mxu0 %v1220_v41 }
 0x3c8   : > { %v1873_v14 = vpop.eup %1872  ;;  %1892 = vpow2.f32 %v1179_v30  ;;  %v1221_v62 = vpack.c.bf16 %v1871_v48, %v1867_v54  ;;  %1268 = vmatpush1.bf16.msra.mxu0 %v1219_v36  ;;  %v1238_v30 = vld [vmem:[%s2519_s21 + $0x28] sm:$0xff]  ;;  %v1240_v36 = vld [vmem:[%s2519_s21 + $0x38] sm:$0xff]  ;;  %v1243_v54 = vpack.c.bf16 %v1235_v61, %v1233_v23 }
 0x3c9   : > { %v1875_v18 = vpop.eup %1874  ;;  %1894 = vpow2.f32 %v1181_v20  ;;  %v1222_v7 = vpack.c.bf16 %v1873_v14, %v1869_v34  ;;  %v1246_v37 = vpack.c.bf16 %v1240_v36, %v1238_v30  ;;  %v1239_v20 = vld [vmem:[%s2519_s21 + $0x30] sm:$0xff]  ;;  %v3475_v48 = vld [vmem:[#allocation56_spill] sm:$0xff]  ;;  %v3477_v14 = vld [vmem:[#allocation54_spill] sm:$0xff] }
 0x3ca   : > { %v1877_v27 = vpop.eup %1876  ;;  %1896 = vpow2.f32 %v1183_v24  ;;  %v1245_v41 = vpack.c.bf16 %v1239_v20, %v1237_v44  ;;  %v3474_v24 = vld [vmem:[#allocation53_spill] sm:$0xff]  ;;  %v1429_v44 = vld [vmem:[%s2504_s19 + $0x30] sm:$0xff] }
 0x3cb   : > { %v1879_v9 = vpop.eup %1878  ;;  %1898 = vpow2.f32 %v1185_v45  ;;  %1269 = vmatprep.subr.bf16.mxu0 %v1222_v7  ;;  %v3476_v3 = vsub.f32 %v3474_v24, %v3475_v48  ;;  %v1430_v24 = vld [vmem:[%s2504_s19 + $0x38] sm:$0xff] }
 0x3cc   : > { %v1881_v1 = vpop.eup %1880  ;;  %1900 = vpow2.f32 %v1187_v26  ;;  %v1223_v11 = vpack.c.bf16 %v1879_v9, %v1875_v18  ;;  %1270 = vmatpush1.bf16.msra.mxu0 %v1221_v62  ;;  %v3478_v26 = vld [vmem:[#allocation55_spill] sm:$0xff] }
 0x3cd   : > { %v1883_v51 = vpop.eup %1882  ;;  %1902 = vpow2.f32 %v1189_v58  ;;  %v1224_v46 = vpack.c.bf16 %v1881_v1, %v1877_v27  ;;  %v996_v2 = vmul.f32 1.442695, %v3476_v3 }
 0x3ce   : > { %v1885_v53 = vpop.eup %1884  ;;  %1904 = vpow2.f32 %v1191_v49 }
 0x3cf   : > { %v1887_v10 = vpop.eup %1886  ;;  %1906 = vpow2.f32 %v1193_v29  ;;  %1271 = vmatprep.subr.bf16.mxu0 %v1224_v46 }
 0x3d0   : > { %v1889_v16 = vpop.eup %1888  ;;  %1908 = vpow2.f32 %v1195_v42  ;;  %v1225_v33 = vpack.c.bf16 %v1887_v10, %v1883_v51  ;;  %1272 = vmatpush1.bf16.msra.mxu0 %v1223_v11 }
 0x3d1   : > { %v1891_v15 = vpop.eup %1890  ;;  %1910 = vpow2.f32 %v1197_v13  ;;  %v1226_v60 = vpack.c.bf16 %v1889_v16, %v1885_v53  ;;  %v1310_v16 = vld [vmem:[#allocation4] sm:$0x3] }
 0x3d2   : > { %v1893_v12 = vpop.eup %1892  ;;  %1912 = vpow2.f32 %v996_v2 }
 0x3d3   : > { %v1895_v8 = vpop.eup %1894  ;;  %1273 = vmatprep.subr.bf16.mxu0 %v1226_v60 }
 0x3d4   : > { %v1897_v55 = vpop.eup %1896  ;;  %v1227_v40 = vpack.c.bf16 %v1895_v8, %v1891_v15  ;;  %1274 = vmatpush1.bf16.msra.mxu0 %v1225_v33  ;;  %v3479_v15 = vld [vmem:[#allocation52_spill] sm:$0xff] }
 0x3d5   : > { %v1899_v35 = vpop.eup %1898  ;;  %v1228_v17 = vpack.c.bf16 %v1897_v55, %v1893_v12 }
 0x3d6   : > { %v1901_v50 = vpop.eup %1900 }
 0x3d7   : > { %v1903_v19 = vpop.eup %1902  ;;  %1275 = vmatprep.subr.bf16.mxu0 %v1228_v17 }
 0x3d8   : > { %v1905_v25 = vpop.eup %1904  ;;  %v1229_v57 = vpack.c.bf16 %v1903_v19, %v1899_v35  ;;  %1276 = vmatpush1.bf16.msra.mxu0 %v1227_v40 }
 0x3d9   : > { %v1907_v39 = vpop.eup %1906  ;;  %v1230_v28 = vpack.c.bf16 %v1905_v25, %v1901_v50  ;;  %v1414_v25 = vstv %s1413_s5 }
 0x3da   : > { %v1909_v22 = vpop.eup %1908 }
 0x3db   : > { %v1911_v38 = vpop.eup %1910  ;;  %v1232_v59 = vpack.c.bf16 %v2977_v4, %v1909_v22  ;;  %1277 = vmatprep.subr.bf16.mxu0 %v1230_v28  ;;  %v1242_v4 = vld [vmem:[%s2519_s21 + $0x48] sm:$0x1] }
 0x3dc   : > { %v1231_v32 = vpack.c.bf16 %v1911_v38, %v1907_v39  ;;  %1278 = vmatpush1.bf16.msra.mxu0 %v1229_v57  ;;  %v1248_v34 = vpack.c.bf16 %v1242_v4, %v1242_v4  ;;  %v1913_v45 = vpop.eup %1912 }
 0x3dd   : > { %1279 = vmatprep.subr.bf16.mxu0 %v1232_v59  ;;  %v1348_v5 = vrot.slane %v1913_v45, %v3477_v14  ;;  %v1352_v62 = vrot.slane %v1913_v45, %v3478_v26  ;;  %v1311_v12 = vmul.f32 %v1913_v45, %v1310_v16  ;;  %v1423_v59 = vld [vmem:[%s2504_s19] sm:$0xff] }
 0x3df   : > { %v1355_v18 = vmul.f32 0.0, %v1348_v5  ;;  %v1356_v58 = vmul.f32 0.0, %v1352_v62 }
 0x3e0   : > { %1280 = vmatpush1.bf16.msra.mxu0 %v1231_v32  ;;  %v1424_v32 = vld [vmem:[%s2504_s19 + $0x8] sm:$0xff] }
 0x3e3   : > { %1282 = vmatmul.mubr.bf16.vlgmr.msra.gmra.mrb[8].mxu0 %v1243_v54  ;;  %v1425_v54 = vld [vmem:[%s2504_s19 + $0x10] sm:$0xff] }
 0x3e4   : > { %1291 = vmatprep.mubr.bf16.mxu0 %v1246_v37  ;;  %v1427_v37 = vld [vmem:[%s2504_s19 + $0x20] sm:$0xff] }
 0x3eb   : > { %1292 = vmatmul.mubr.bf16.gmra.mrb[12].mxu0 %v1245_v41 }
 0x3ec   : > { %1301 = vmatprep.mubr.bf16.mxu0 %v1248_v34 }
 0x3f3   : > { %1302 = vmatmul.mubr.bf16.gmra.mrb[16].mxu0 %v1247_v43  ;;  %v1428_v43 = vld [vmem:[%s2504_s19 + $0x28] sm:$0xff] }
 0x4b6   : > { %v1283_v47 = vpop.f32.mrb[8].mxu0 }
 0x4b7   : > { %v1363_v7 = vadd.f32 %v1355_v18, %v1283_v47  ;;  %v1285_v27 = vpop.f32.mrb[9].mxu0 }
 0x4b8   : > { %v1364_v52 = vadd.f32 %v1356_v58, %v1285_v27  ;;  %v1287_v56 = vpop.f32.mrb[10].mxu0 }
 0x4b9   : > { %v1365_v49 = vadd.f32 %v1355_v18, %v1287_v56  ;;  %v1289_v9 = vpop.f32.mrb[11].mxu0 }
 0x4ba   : > { %v1366_v6 = vadd.f32 %v1356_v58, %v1289_v9 }
 0x4be   : > { %v1293_v29 = vpop.f32.mrb[12].mxu0 }
 0x4bf   : > { %v1367_v1 = vadd.f32 %v1355_v18, %v1293_v29  ;;  %v1295_v0 = vpop.f32.mrb[13].mxu0 }
 0x4c0   : > { %v1368_v42 = vadd.f32 %v1356_v58, %v1295_v0  ;;  %v1297_v11 = vpop.f32.mrb[14].mxu0 }
 0x4c1   : > { %v1369_v51 = vadd.f32 %v1355_v18, %v1297_v11  ;;  %v1299_v21 = vpop.f32.mrb[15].mxu0 }
 0x4c2   : > { %v1370_v31 = vadd.f32 %v1356_v58, %v1299_v21 }
 0x4c6   : > { %v1303_v13 = vpop.f32.mrb[16].mxu0 }
 0x4c7   : > { %v1305_v46 = vpop.f32.mrb[17].mxu0 }
 0x4c8   : > { %v1314_v53 = vcombine.low %v1303_v13, %v1305_v46  ;;  %v1307_v10 = vpop.f32.mrb[18].mxu0 }
 0x4c9   : > { %v1308_v33 = vpop.f32.mrb[19].mxu0 }
 0x4ca   : > { %v1321_v60 = vrot.slane %v1314_v53, %v3479_v15 }
 0x4cc   : > { %v1328_v8 = vrot.slane %v1321_v60, %v3479_v15 }
 0x4ce   : > { %v1330_v55 = vadd.f32 %v1328_v8, %v1311_v12 }
 0x4d0   : > { %1335 = vst.msk [vmem:[#allocation4] sm:$0x3] %vm2527_vm0, %v1330_v55 }
 0x4d7   : > { %v1391_v35 = vld [vmem:[#allocation4] sm:$0x3] }
 0x4d8   : > { %v1396_v17 = vrot.slane %v1391_v35, %v3477_v14  ;;  %v1400_v50 = vrot.slane %v1391_v35, %v3478_v26 }
 0x4da   : > { %1914 = vrcp.f32 %v1396_v17 }
 0x4db   : > { %1916 = vrcp.f32 %v1400_v50 }
 0x4e4   : > { %v1915_v19 = vpop.eup %1914 }
 0x4e5   : > { %v1917_v57 = vpop.eup %1916  ;;  %v1404_v39 = vmul.f32 %v1915_v19, %v1363_v7  ;;  %v1407_v28 = vmul.f32 %v1915_v19, %v1365_v49  ;;  %v1409_v22 = vmul.f32 %v1915_v19, %v1367_v1  ;;  %v1411_v38 = vmul.f32 %v1915_v19, %v1369_v51 }
 0x4e6   : > { %v1406_v23 = vmul.f32 %v1917_v57, %v1364_v52  ;;  %v1408_v61 = vmul.f32 %v1917_v57, %v1366_v6  ;;  %v1410_v30 = vmul.f32 %v1917_v57, %v1368_v42  ;;  %v1412_v36 = vmul.f32 %v1917_v57, %v1370_v31 }
 0x4e7   : > { %v1415_v20 = vmul.f32 %v1414_v25, %v1404_v39  ;;  %v1417_v4 = vmul.f32 %v1414_v25, %v1407_v28  ;;  %v1419_v41 = vmul.f32 %v1414_v25, %v1409_v22  ;;  %v1421_v34 = vmul.f32 %v1414_v25, %v1411_v38 }
 0x4e8   : > { %v1416_v48 = vmul.f32 %v1414_v25, %v1406_v23  ;;  %v1418_v3 = vmul.f32 %v1414_v25, %v1408_v61  ;;  %v1420_v2 = vmul.f32 %v1414_v25, %v1410_v30  ;;  %v1422_v45 = vmul.f32 %v1414_v25, %v1412_v36 }
 0x4e9   : > { %v1431_v14 = vadd.f32 %v1423_v59, %v1415_v20  ;;  %v1433_v5 = vadd.f32 %v1425_v54, %v1417_v4  ;;  %v1435_v26 = vadd.f32 %v1427_v37, %v1419_v41  ;;  %v1437_v62 = vadd.f32 %v1429_v44, %v1421_v34 }
 0x4ea   : > { %v1432_v18 = vadd.f32 %v1424_v32, %v1416_v48  ;;  %v1434_v47 = vadd.f32 %v1426_v63, %v1418_v3  ;;  %v1436_v58 = vadd.f32 %v1428_v43, %v1420_v2  ;;  %v1438_v7 = vadd.f32 %v1430_v24, %v1422_v45 }
 0x4eb   : > { %1439 = vst [vmem:[%s409_s14] sm:$0xff] %v1431_v14  ;;  %1441 = vst [vmem:[%s409_s14 + $0x10] sm:$0xff] %v1433_v5 }
 0x4ec   : > { %1443 = vst [vmem:[%s409_s14 + $0x20] sm:$0xff] %v1435_v26  ;;  %1445 = vst [vmem:[%s409_s14 + $0x30] sm:$0xff] %v1437_v62 }
 0x4ed   : > { %1440 = vst [vmem:[%s409_s14 + $0x8] sm:$0xff] %v1432_v18  ;;  %1442 = vst [vmem:[%s409_s14 + $0x18] sm:$0xff] %v1434_v47 }
 0x4ee   : > { %1444 = vst [vmem:[%s409_s14 + $0x28] sm:$0xff] %v1436_v58  ;;  %1446 = vst [vmem:[%s409_s14 + $0x38] sm:$0xff] %v1438_v7 }
 0x4ef   : > { %2077 = shalt.err (!%p2074_p11)
}
 0x4f0   : > { %s2078_s17 = scalar_lea.hbm %s3162_s1, 1024  ;;  %s2082_s19 = scalar_lea.hbm %s3219_s6, 2048 }
 0x4f1   : > { %p2079_p8 = scmp.ne.s32.totalorder %s3162_s1, %s2078_s17  ;;  %p2083_p3 = scmp.lt.u32.totalorder %s3162_s1, %s3219_s6 }
 0x4f2   : > { %p2084_p10 = scmp.lt.u32.totalorder %s2082_s19, %s2078_s17  ;;  %p2086_p1 = scmp.lt.u32.totalorder %s2078_s17, %s3162_s1 }
 0x4f3   : > { %p2080_p5 = pnand %p2079_p8, %p3481_p4 }
 0x4f4   : > { %p2085_p12 = por %p2084_p10, %p2083_p3 }
 0x4f5   : > { %p2081_p9 = pneg %p2080_p5 }
 0x4f6   : > { %p2087_p0 = por %p2086_p1, %p2085_p12 }
 0x4f8   : > { %p2088_p7 = pnand %p2087_p0, %p2081_p9 }
 0x4fa   : > { %2091 = shalt.err (!%p2088_p7)
}
 0x4fb   : > { %s2170_s23 = smov 256   ;;  %s2171_s22 = smov 16  }
 0x4fc   : > { %1693 = dma.vmem_to_hbm [thread:$0]  (%p3481_p4), %s3164_s29, 1024, %s3162_s1, %s1448_s3, %s2170_s23, %s2170_s23, %s2171_s22  }
 0x4fd PF: > { %s3482_s21 = sld [smem:[#allocation21_spill]]  ;;  %s3483_s5 = sld [smem:[#allocation22_spill]] }
 0x4fe   : > { %p3485_p13 = scmp.ge.s32.totalorder %s2154_s28, 2 }
 0x503   : > { %s1478_s8 = sand.u32 1, %s3482_s21   ;;  %p3484_p2 = scmp.ne.s32.totalorder %s3483_s5, 0 }
 0x504   : > { %s1479_s14 = scalar_lea.sflag [#allocation9], %s1478_s8 }
 0x505   : > { %p1713_p6 = pnand %p3485_p13, %p3484_p2 }
 0x507   : > { %2129 = dma.done.wait (!%p1713_p6), %s1479_s14, 1024  }
 0x508   : > { %2131 = vsyncadd (!%p1713_p6), %s1479_s14, 4294966272  ;;  %s27_s28 = sadd.s32 1, %s2154_s28   ;;  %s3486_s12 = sld [smem:[#allocation24_spill]] }
 0x509   : > { %p24_p11 = scmp.ge.s32.totalorder %s27_s28, 4   ;;  %s3487_s9 = sld [smem:[#allocation23_spill]] }
 0x50a   : > { %s3488_s23 = smov %s2138_s24  ;;  %s3489_s24 = smov %s2142_s25 }
 0x50b   : > { %s3491_s26 = smov %s2150_s27  ;;  %26 = sbr.rel (!%p24_p11) target bundleno = 13 (0xd), region = 129 }
 0x50e   : > { %s3490_s25 = smov %s3486_s12 }
 0x50f   : > { %s3492_s27 = smov %s3487_s9 }
 0x512   :  { %1484 = vsyncpa [#allocation8], 1 }
 0x513   :  { %1486 = vsyncpa [#allocation8 + $0x1], 1 }
 0x514   :  { %1487 = vsyncpa [#allocation11], 1 }
 0x515   :  { %1489 = vsyncpa [#allocation11 + $0x1], 1 }
 0x516   :  { %1490 = vsyncpa [#allocation14], 1 }
 0x517   :  { %1491 = vsyncpa [#allocation9], 1 }
 0x518   :  { %1493 = vsyncpa [#allocation9 + $0x1], 1 }

</bundles_post_ra>
